<compile_context>
chip_gen: v7x
topology: tpu7x:2x2x1
jax: 0.10.0
libtpu: 0.0.40
codegen_flags: <defaults>
</compile_context>

<pallas_src>
import jax
import jax.numpy as jnp
from jax.experimental import pallas as pl
from jax.experimental.pallas import tpu as pltpu


# ----------------------------- encoder kernel -------------------------------

def _encoder_kernel(x_ref, w1_ref, b1_ref, w2_ref, b2_ref, w3_ref, feat_ref,
                    *, chunk=256):
    """Fused PointNet encoder tile step.

    x_ref   : (1, tn, 3)            channels-last tile of points (f32)
    w1/b1   : (3, 64) / (1, 64)     layer-1 weight (BN folded) / bias, f32
    w2/b2   : (64, 128) / (1, 128)  layer-2 weight (bf16) / bias (f32)
    w3      : (128, 1024)           layer-3 weight (bf16); bias deferred
    feat_ref: (1, 1, 1024)          output block, running max across N-tiles
    """
    j = pl.program_id(1)

    @pl.when(j == 0)
    def _init():
        feat_ref[...] = jnp.full(feat_ref.shape, -jnp.inf, feat_ref.dtype)

    x = x_ref[0]                                            # (tn, 3) f32

    # Layer 1 (K=3): three broadcast FMAs on the VPU, MXU stays free.
    w1 = w1_ref[...]
    h = (x[:, 0:1] * w1[0:1, :]
         + x[:, 1:2] * w1[1:2, :]
         + x[:, 2:3] * w1[2:3, :]) + b1_ref[...]
    h = jnp.maximum(h, 0.0)                                 # (tn, 64)  f32

    # Layer 2: bf16 MXU inputs, f32 accumulation, f32 bias+ReLU, one cast.
    h = jnp.dot(h.astype(jnp.bfloat16), w2_ref[...],
                preferred_element_type=jnp.float32) + b2_ref[...]
    h = jnp.maximum(h, 0.0).astype(jnp.bfloat16)            # (tn, 128) bf16

    # Layer 3 fused with the global max-pool, chunked over output channels.
    # bias-add + ReLU commute with the channel-wise max; they are deferred to
    # the head kernel (applied exactly once on the pooled feature), so no full
    # (tn, 1024) f32 epilogue passes here.
    f_dim = feat_ref.shape[-1]
    for c in range(0, f_dim, chunk):
        p = jnp.dot(h, w3_ref[:, c:c + chunk],
                    preferred_element_type=jnp.float32)     # (tn, chunk) f32
        m = jnp.max(p, axis=0, keepdims=True)[None]         # (1, 1, chunk)
        feat_ref[:, :, c:c + chunk] = jnp.maximum(
            feat_ref[:, :, c:c + chunk], m)


# ------------------------------- head kernel --------------------------------

def _head_kernel(feat_ref, b3_ref, fw1_ref, fb1_ref, fw2_ref, fb2_ref,
                 fw3_ref, fb3_ref, out_ref):
    """Batched classification head: deferred layer-3 epilogue + fc stack."""
    # Deferred encoder layer-3 epilogue: bias + ReLU after the max-pool.
    f = jnp.maximum(feat_ref[...] + b3_ref[...], 0.0)                  # (B, 1024)
    g = jnp.dot(f.astype(jnp.bfloat16), fw1_ref[...],
                preferred_element_type=jnp.float32) + fb1_ref[...]
    g = jnp.maximum(g, 0.0)                                            # (B, 512)
    g = jnp.dot(g.astype(jnp.bfloat16), fw2_ref[...],
                preferred_element_type=jnp.float32) + fb2_ref[...]
    g = jnp.maximum(g, 0.0)                                            # (B, 256)
    # Dropout(p=0.3) is identity in eval mode.
    logits = jnp.dot(g, fw3_ref[...],
                     preferred_element_type=jnp.float32) + fb3_ref[...]
    z = logits - jnp.max(logits, axis=-1, keepdims=True)
    out_ref[...] = z - jnp.log(jnp.sum(jnp.exp(z), axis=-1, keepdims=True))


# ------------------------------- wrapper ------------------------------------

def _pick_point_tile(n, tn_max=2048):
    """Largest tile <= tn_max dividing N; prefer multiples of 256, then 8."""
    if n <= tn_max:
        return n
    for step in (256, 8):
        best = 0
        for d in range(step, tn_max + 1, step):
            if n % d == 0:
                best = d
        if best:
            return best
    return n  # no nice divisor (e.g. prime N): single tile


def cls_model_forward(points, enc_params, head_params, *, tn_max=2048):
    """points: (B, N, 3) float32 -> (B, num_classes) log-probabilities."""
    B, N, C = points.shape
    assert C == 3
    # torch `.view(B, 3, -1)` is a RAW reshape; then transpose so channels sit
    # on the 128-lane axis (layout plumbing done once, outside the kernels).
    x = jnp.transpose(points.reshape(B, 3, N), (0, 2, 1))          # (B, N, 3)

    (w1, b1), (w2, b2), (w3, b3) = enc_params
    (fw1, fb1), (fw2, fb2), (fw3, fb3) = head_params
    num_classes = fw3.shape[1]
    feat_dim = w3.shape[1]

    tn = _pick_point_tile(N, tn_max)
    assert N % tn == 0

    def rep(arr):  # whole-array block, same block for every grid step
        return pl.BlockSpec(arr.shape, lambda b, j: (0,) * arr.ndim)

    # --- encoder: grid (B, N//tn); output block is the max-pool accumulator.
    feat = pl.pallas_call(
        _encoder_kernel,
        out_shape=jax.ShapeDtypeStruct((B, 1, feat_dim), jnp.float32),
        grid=(B, N // tn),
        in_specs=[
            pl.BlockSpec((1, tn, 3), lambda b, j: (b, j, 0)),
            rep(w1), rep(b1), rep(w2), rep(b2), rep(w3),
        ],
        out_specs=pl.BlockSpec((1, 1, feat_dim), lambda b, j: (b, 0, 0)),
        compiler_params=pltpu.CompilerParams(
            dimension_semantics=("parallel", "arbitrary")),
    )(x, w1, b1, w2, b2, w3)

    feat2d = feat[:, 0, :]                                         # (B, 1024)

    # --- head: one batched matmul stack over all B rows.
    def full(arr):
        return pl.BlockSpec(arr.shape, lambda i: (0,) * arr.ndim)

    out = pl.pallas_call(
        _head_kernel,
        out_shape=jax.ShapeDtypeStruct((B, num_classes), jnp.float32),
        grid=(1,),
        in_specs=[full(feat2d), full(b3), full(fw1), full(fb1),
                  full(fw2), full(fb2), full(fw3), full(fb3)],
        out_specs=pl.BlockSpec((B, num_classes), lambda i: (0, 0)),
        compiler_params=pltpu.CompilerParams(
            dimension_semantics=("arbitrary",)),
    )(feat2d, b3, fw1, fb1, fw2, fb2, fw3, fb3)
    return out


# --------------------------- params & reference -----------------------------

def fuse_bn_into_conv(w, b_conv, gamma, beta, mean, var, eps=1e-5):
    """Fold eval-mode BatchNorm1d into the 1x1 conv weight/bias."""
    scale = gamma / jnp.sqrt(var + eps)
    w_fused = w * scale[None, :]
    b_fused = (beta + scale * (b_conv - mean)).reshape(1, -1)
    return w_fused, b_fused


def make_params(key, num_classes=3):
    ks = jax.random.split(key, 12)

    def init(k, shape, scale=0.1):
        return scale * jax.random.normal(k, shape, jnp.float32)

    enc_params = []
    dims = [(3, 64), (64, 128), (128, 1024)]
    for i, (cin, cout) in enumerate(dims):
        w = init(ks[2 * i], (cin, cout))                 # conv1d weight (transposed)
        b_conv = init(ks[2 * i + 1], (cout,))
        gamma = jnp.ones((cout,), jnp.float32)           # BatchNorm1d defaults
        beta = jnp.zeros((cout,), jnp.float32)
        mean = jnp.zeros((cout,), jnp.float32)
        var = jnp.ones((cout,), jnp.float32)
        w_f, b_f = fuse_bn_into_conv(w, b_conv, gamma, beta, mean, var)
        if i > 0:                                        # layers 2/3 feed the MXU as bf16
            w_f = w_f.astype(jnp.bfloat16)
        enc_params.append((w_f, b_f))

    head_params = []
    fdims = [(1024, 512), (512, 256), (256, num_classes)]
    for i, (cin, cout) in enumerate(fdims):
        w = init(ks[6 + 2 * i], (cin, cout))             # linear weight (transposed)
        b = init(ks[6 + 2 * i + 1], (1, cout))
        if i < 2:                                        # fc1/fc2 feed the MXU as bf16
            w = w.astype(jnp.bfloat16)
        head_params.append((w, b))

    return tuple(enc_params), tuple(head_params)


def ref_forward(points, enc_params, head_params):
    """Pure-JAX reference (precision-matched: bf16 MXU inputs, f32 accum)."""
    B, N, _ = points.shape
    hi = jax.lax.Precision.HIGHEST
    x = jnp.transpose(points.reshape(B, 3, N), (0, 2, 1))
    (w1, b1), (w2, b2), (w3, b3) = enc_params
    h = jax.nn.relu(jnp.einsum('bnc,cd->bnd', x, w1, precision=hi) + b1)
    h = jax.nn.relu(jnp.einsum('bnc,cd->bnd', h.astype(jnp.bfloat16), w2,
                               preferred_element_type=jnp.float32) + b2)
    h = jax.nn.relu(jnp.einsum('bnc,cd->bnd', h.astype(jnp.bfloat16), w3,
                               preferred_element_type=jnp.float32) + b3)
    feat = jnp.max(h, axis=1)                                   # global max pool
    (fw1, fb1), (fw2, fb2), (fw3, fb3) = head_params
    g = jax.nn.relu(jnp.dot(feat.astype(jnp.bfloat16), fw1,
                            preferred_element_type=jnp.float32) + fb1)
    g = jax.nn.relu(jnp.dot(g.astype(jnp.bfloat16), fw2,
                            preferred_element_type=jnp.float32) + fb2)
    logits = jnp.dot(g, fw3, precision=hi) + fb3
    return jax.nn.log_softmax(logits, axis=1)


# --------------------------------- main -------------------------------------

if __name__ == "__main__":
    B, N, num_classes = 2, 512, 3

    key = jax.random.PRNGKey(0)
    k_params, k_pts = jax.random.split(key)
    enc_params, head_params = make_params(k_params, num_classes)
    points = jax.random.normal(k_pts, (B, N, 3), jnp.float32)

    # tn_max=256 so the test exercises the multi-tile running-max path (grid j>1).
    out = jax.block_until_ready(
        cls_model_forward(points, enc_params, head_params, tn_max=256))
    ref = ref_forward(points, enc_params, head_params)

    assert out.shape == (B, num_classes)
    assert bool(jnp.all(jnp.isfinite(out)))
    # log-probabilities must normalize per row
    assert bool(jnp.allclose(jnp.sum(jnp.exp(out), axis=1), 1.0, atol=1e-3))
    assert bool(jnp.allclose(out, ref, atol=2e-2, rtol=2e-2)), (out, ref)

    print("KERNEL_OK")
</pallas_src>

<mosaic_0001>
module attributes {stable_mosaic.version = 11 : i64} {
  func.func @_encoder_kernel(%arg0: i32, %arg1: i32, %arg2: memref<1x256x3xf32, #tpu.memory_space<vmem>>, %arg3: memref<3x64xf32, #tpu.memory_space<vmem>>, %arg4: memref<1x64xf32, #tpu.memory_space<vmem>>, %arg5: memref<64x128xbf16, #tpu.memory_space<vmem>>, %arg6: memref<1x128xf32, #tpu.memory_space<vmem>>, %arg7: memref<128x1024xbf16, #tpu.memory_space<vmem>>, %arg8: memref<1x1x1024xf32, #tpu.memory_space<vmem>>) attributes {dimension_semantics = [#tpu.dimension_semantics<parallel>, #tpu.dimension_semantics<arbitrary>], iteration_bounds = array<i64: 2, 2>, scalar_prefetch = 0 : i64, scratch_operands = 0 : i64, tpu.core_type = #tpu.core_type<tc>, window_params = [{transform_indices = @transform_0, window_bounds = array<i64: 1, 256, 3>}, {pipeline_mode = #tpu.pipeline_mode<synchronous>, transform_indices = @transform_1, window_bounds = array<i64: 3, 64>}, {pipeline_mode = #tpu.pipeline_mode<synchronous>, transform_indices = @transform_2, window_bounds = array<i64: 1, 64>}, {pipeline_mode = #tpu.pipeline_mode<synchronous>, transform_indices = @transform_3, window_bounds = array<i64: 64, 128>}, {pipeline_mode = #tpu.pipeline_mode<synchronous>, transform_indices = @transform_4, window_bounds = array<i64: 1, 128>}, {pipeline_mode = #tpu.pipeline_mode<synchronous>, transform_indices = @transform_5, window_bounds = array<i64: 128, 1024>}, {transform_indices = @transform_6, window_bounds = array<i64: 1, 1, 1024>}]} {
    %c0_i32 = arith.constant 0 : i32
    %0 = arith.cmpi eq, %arg1, %c0_i32 : i32
    %1 = arith.extui %0 : i1 to i32
    %c0_i32_0 = arith.constant 0 : i32
    %2 = arith.cmpi ne, %1, %c0_i32_0 : i32
    scf.if %2 {
      %cst_50 = arith.constant 0xFF800000 : f32
      %69 = vector.broadcast %cst_50 : f32 to vector<1x1x1024xf32>
      %c0_51 = arith.constant 0 : index
      %c0_52 = arith.constant 0 : index
      %c0_53 = arith.constant 0 : index
      %70 = vector.load %arg8[%c0_51, %c0_52, %c0_53] : memref<1x1x1024xf32, #tpu.memory_space<vmem>>, vector<1x1x1024xf32>
      tpu.vector_store %arg8[%c0_51, %c0_52, %c0_53], %69 {strides = array<i32>} : memref<1x1x1024xf32, #tpu.memory_space<vmem>>, vector<1x1x1024xf32>,
    } else {
    }
    %c0 = arith.constant 0 : index
    %c0_1 = arith.constant 0 : index
    %c0_2 = arith.constant 0 : index
    %3 = vector.load %arg2[%c0, %c0_1, %c0_2] : memref<1x256x3xf32, #tpu.memory_space<vmem>>, vector<1x256x3xf32>
    %4 = vector.shape_cast %3 : vector<1x256x3xf32> to vector<256x3xf32>
    %c0_3 = arith.constant 0 : index
    %c0_4 = arith.constant 0 : index
    %5 = vector.load %arg3[%c0_3, %c0_4] : memref<3x64xf32, #tpu.memory_space<vmem>>, vector<3x64xf32>
    %6 = vector.extract_strided_slice %4 {offsets = [0, 0], sizes = [256, 1], strides = [1, 1]} : vector<256x3xf32> to vector<256x1xf32>
    %7 = vector.extract_strided_slice %5 {offsets = [0, 0], sizes = [1, 64], strides = [1, 1]} : vector<3x64xf32> to vector<1x64xf32>
    %8 = vector.broadcast %6 : vector<256x1xf32> to vector<256x64xf32>
    %9 = vector.broadcast %7 : vector<1x64xf32> to vector<256x64xf32>
    %10 = arith.mulf %8, %9 : vector<256x64xf32>
    %11 = vector.extract_strided_slice %4 {offsets = [0, 1], sizes = [256, 1], strides = [1, 1]} : vector<256x3xf32> to vector<256x1xf32>
    %12 = vector.extract_strided_slice %5 {offsets = [1, 0], sizes = [1, 64], strides = [1, 1]} : vector<3x64xf32> to vector<1x64xf32>
    %13 = vector.broadcast %11 : vector<256x1xf32> to vector<256x64xf32>
    %14 = vector.broadcast %12 : vector<1x64xf32> to vector<256x64xf32>
    %15 = arith.mulf %13, %14 : vector<256x64xf32>
    %16 = arith.addf %10, %15 : vector<256x64xf32>
    %17 = vector.extract_strided_slice %4 {offsets = [0, 2], sizes = [256, 1], strides = [1, 1]} : vector<256x3xf32> to vector<256x1xf32>
    %18 = vector.extract_strided_slice %5 {offsets = [2, 0], sizes = [1, 64], strides = [1, 1]} : vector<3x64xf32> to vector<1x64xf32>
    %19 = vector.broadcast %17 : vector<256x1xf32> to vector<256x64xf32>
    %20 = vector.broadcast %18 : vector<1x64xf32> to vector<256x64xf32>
    %21 = arith.mulf %19, %20 : vector<256x64xf32>
    %22 = arith.addf %16, %21 : vector<256x64xf32>
    %c0_5 = arith.constant 0 : index
    %c0_6 = arith.constant 0 : index
    %23 = vector.load %arg4[%c0_5, %c0_6] : memref<1x64xf32, #tpu.memory_space<vmem>>, vector<1x64xf32>
    %24 = vector.broadcast %23 : vector<1x64xf32> to vector<256x64xf32>
    %25 = arith.addf %22, %24 : vector<256x64xf32>
    %cst = arith.constant 0.000000e+00 : f32
    %26 = vector.broadcast %cst : f32 to vector<256x64xf32>
    %27 = arith.maximumf %25, %26 : vector<256x64xf32>
    %28 = arith.truncf %27 : vector<256x64xf32> to vector<256x64xbf16>
    %c0_7 = arith.constant 0 : index
    %c0_8 = arith.constant 0 : index
    %29 = vector.load %arg5[%c0_7, %c0_8] : memref<64x128xbf16, #tpu.memory_space<vmem>>, vector<64x128xbf16>
    %cst_9 = arith.constant dense<0.000000e+00> : vector<256x128xf32>
    %30 = tpu.matmul %28, %29, %cst_9 {dimension_numbers = #tpu.dot_dimension_numbers<[1], [0], [0], [1], [0, 0, 1, 1], [], []>} : vector<256x64xbf16>, vector<64x128xbf16>, vector<256x128xf32> -> vector<256x128xf32>
    %c0_10 = arith.constant 0 : index
    %c0_11 = arith.constant 0 : index
    %31 = vector.load %arg6[%c0_10, %c0_11] : memref<1x128xf32, #tpu.memory_space<vmem>>, vector<1x128xf32>
    %32 = vector.broadcast %31 : vector<1x128xf32> to vector<256x128xf32>
    %33 = arith.addf %30, %32 : vector<256x128xf32>
    %cst_12 = arith.constant 0.000000e+00 : f32
    %34 = vector.broadcast %cst_12 : f32 to vector<256x128xf32>
    %35 = arith.maximumf %33, %34 : vector<256x128xf32>
    %36 = arith.truncf %35 : vector<256x128xf32> to vector<256x128xbf16>
    %c0_13 = arith.constant 0 : index
    %c0_14 = arith.constant 0 : index
    %37 = vector.load %arg7[%c0_13, %c0_14] : memref<128x1024xbf16, #tpu.memory_space<vmem>>, vector<128x256xbf16>
    %cst_15 = arith.constant dense<0.000000e+00> : vector<256x256xf32>
    %38 = tpu.matmul %36, %37, %cst_15 {dimension_numbers = #tpu.dot_dimension_numbers<[1], [0], [0], [1], [0, 0, 1, 1], [], []>} : vector<256x128xbf16>, vector<128x256xbf16>, vector<256x256xf32> -> vector<256x256xf32>
    %cst_16 = arith.constant dense<0xFF800000> : vector<256xf32>
    %39 = vector.multi_reduction <maximumf>, %38, %cst_16 [0] : vector<256x256xf32> to vector<256xf32>
    %40 = vector.shape_cast %39 : vector<256xf32> to vector<1x256xf32>
    %41 = vector.shape_cast %40 : vector<1x256xf32> to vector<1x1x256xf32>
    %c0_17 = arith.constant 0 : index
    %c0_18 = arith.constant 0 : index
    %c0_19 = arith.constant 0 : index
    %42 = vector.load %arg8[%c0_17, %c0_18, %c0_19] : memref<1x1x1024xf32, #tpu.memory_space<vmem>>, vector<1x1x256xf32>
    %43 = arith.maximumf %42, %41 : vector<1x1x256xf32>
    %c0_20 = arith.constant 0 : index
    %c0_21 = arith.constant 0 : index
    %c0_22 = arith.constant 0 : index
    %44 = vector.load %arg8[%c0_20, %c0_21, %c0_22] : memref<1x1x1024xf32, #tpu.memory_space<vmem>>, vector<1x1x256xf32>
    tpu.vector_store %arg8[%c0_20, %c0_21, %c0_22], %43 {strides = array<i32>} : memref<1x1x1024xf32, #tpu.memory_space<vmem>>, vector<1x1x256xf32>,
    %c0_23 = arith.constant 0 : index
    %c256 = arith.constant 256 : index
    %45 = vector.load %arg7[%c0_23, %c256] : memref<128x1024xbf16, #tpu.memory_space<vmem>>, vector<128x256xbf16>
    %cst_24 = arith.constant dense<0.000000e+00> : vector<256x256xf32>
    %46 = tpu.matmul %36, %45, %cst_24 {dimension_numbers = #tpu.dot_dimension_numbers<[1], [0], [0], [1], [0, 0, 1, 1], [], []>} : vector<256x128xbf16>, vector<128x256xbf16>, vector<256x256xf32> -> vector<256x256xf32>
    %cst_25 = arith.constant dense<0xFF800000> : vector<256xf32>
    %47 = vector.multi_reduction <maximumf>, %46, %cst_25 [0] : vector<256x256xf32> to vector<256xf32>
    %48 = vector.shape_cast %47 : vector<256xf32> to vector<1x256xf32>
    %49 = vector.shape_cast %48 : vector<1x256xf32> to vector<1x1x256xf32>
    %c0_26 = arith.constant 0 : index
    %c0_27 = arith.constant 0 : index
    %c256_28 = arith.constant 256 : index
    %50 = vector.load %arg8[%c0_26, %c0_27, %c256_28] : memref<1x1x1024xf32, #tpu.memory_space<vmem>>, vector<1x1x256xf32>
    %51 = arith.maximumf %50, %49 : vector<1x1x256xf32>
    %c0_29 = arith.constant 0 : index
    %c0_30 = arith.constant 0 : index
    %c256_31 = arith.constant 256 : index
    %52 = vector.load %arg8[%c0_29, %c0_30, %c256_31] : memref<1x1x1024xf32, #tpu.memory_space<vmem>>, vector<1x1x256xf32>
    tpu.vector_store %arg8[%c0_29, %c0_30, %c256_31], %51 {strides = array<i32>} : memref<1x1x1024xf32, #tpu.memory_space<vmem>>, vector<1x1x256xf32>,
    %c0_32 = arith.constant 0 : index
    %c512 = arith.constant 512 : index
    %53 = vector.load %arg7[%c0_32, %c512] : memref<128x1024xbf16, #tpu.memory_space<vmem>>, vector<128x256xbf16>
    %cst_33 = arith.constant dense<0.000000e+00> : vector<256x256xf32>
    %54 = tpu.matmul %36, %53, %cst_33 {dimension_numbers = #tpu.dot_dimension_numbers<[1], [0], [0], [1], [0, 0, 1, 1], [], []>} : vector<256x128xbf16>, vector<128x256xbf16>, vector<256x256xf32> -> vector<256x256xf32>
    %cst_34 = arith.constant dense<0xFF800000> : vector<256xf32>
    %55 = vector.multi_reduction <maximumf>, %54, %cst_34 [0] : vector<256x256xf32> to vector<256xf32>
    %56 = vector.shape_cast %55 : vector<256xf32> to vector<1x256xf32>
    %57 = vector.shape_cast %56 : vector<1x256xf32> to vector<1x1x256xf32>
    %c0_35 = arith.constant 0 : index
    %c0_36 = arith.constant 0 : index
    %c512_37 = arith.constant 512 : index
    %58 = vector.load %arg8[%c0_35, %c0_36, %c512_37] : memref<1x1x1024xf32, #tpu.memory_space<vmem>>, vector<1x1x256xf32>
    %59 = arith.maximumf %58, %57 : vector<1x1x256xf32>
    %c0_38 = arith.constant 0 : index
    %c0_39 = arith.constant 0 : index
    %c512_40 = arith.constant 512 : index
    %60 = vector.load %arg8[%c0_38, %c0_39, %c512_40] : memref<1x1x1024xf32, #tpu.memory_space<vmem>>, vector<1x1x256xf32>
    tpu.vector_store %arg8[%c0_38, %c0_39, %c512_40], %59 {strides = array<i32>} : memref<1x1x1024xf32, #tpu.memory_space<vmem>>, vector<1x1x256xf32>,
    %c0_41 = arith.constant 0 : index
    %c768 = arith.constant 768 : index
    %61 = vector.load %arg7[%c0_41, %c768] : memref<128x1024xbf16, #tpu.memory_space<vmem>>, vector<128x256xbf16>
    %cst_42 = arith.constant dense<0.000000e+00> : vector<256x256xf32>
    %62 = tpu.matmul %36, %61, %cst_42 {dimension_numbers = #tpu.dot_dimension_numbers<[1], [0], [0], [1], [0, 0, 1, 1], [], []>} : vector<256x128xbf16>, vector<128x256xbf16>, vector<256x256xf32> -> vector<256x256xf32>
    %cst_43 = arith.constant dense<0xFF800000> : vector<256xf32>
    %63 = vector.multi_reduction <maximumf>, %62, %cst_43 [0] : vector<256x256xf32> to vector<256xf32>
    %64 = vector.shape_cast %63 : vector<256xf32> to vector<1x256xf32>
    %65 = vector.shape_cast %64 : vector<1x256xf32> to vector<1x1x256xf32>
    %c0_44 = arith.constant 0 : index
    %c0_45 = arith.constant 0 : index
    %c768_46 = arith.constant 768 : index
    %66 = vector.load %arg8[%c0_44, %c0_45, %c768_46] : memref<1x1x1024xf32, #tpu.memory_space<vmem>>, vector<1x1x256xf32>
    %67 = arith.maximumf %66, %65 : vector<1x1x256xf32>
    %c0_47 = arith.constant 0 : index
    %c0_48 = arith.constant 0 : index
    %c768_49 = arith.constant 768 : index
    %68 = vector.load %arg8[%c0_47, %c0_48, %c768_49] : memref<1x1x1024xf32, #tpu.memory_space<vmem>>, vector<1x1x256xf32>
    tpu.vector_store %arg8[%c0_47, %c0_48, %c768_49], %67 {strides = array<i32>} : memref<1x1x1024xf32, #tpu.memory_space<vmem>>, vector<1x1x256xf32>,
    return
  }
  func.func @transform_0(%arg0: i32, %arg1: i32) -> (i32, i32, i32) {
    %c0_i32 = arith.constant 0 : i32
    %c0_i32_0 = arith.constant 0 : i32
    return %arg0, %arg1, %c0_i32 : i32, i32, i32
  }
  func.func @transform_1(%arg0: i32, %arg1: i32) -> (i32, i32) {
    %c0_i32 = arith.constant 0 : i32
    %c0_i32_0 = arith.constant 0 : i32
    %c0_i32_1 = arith.constant 0 : i32
    return %c0_i32, %c0_i32_0 : i32, i32
  }
  func.func @transform_2(%arg0: i32, %arg1: i32) -> (i32, i32) {
    %c0_i32 = arith.constant 0 : i32
    %c0_i32_0 = arith.constant 0 : i32
    %c0_i32_1 = arith.constant 0 : i32
    return %c0_i32, %c0_i32_0 : i32, i32
  }
  func.func @transform_3(%arg0: i32, %arg1: i32) -> (i32, i32) {
    %c0_i32 = arith.constant 0 : i32
    %c0_i32_0 = arith.constant 0 : i32
    %c0_i32_1 = arith.constant 0 : i32
    return %c0_i32, %c0_i32_0 : i32, i32
  }
  func.func @transform_4(%arg0: i32, %arg1: i32) -> (i32, i32) {
    %c0_i32 = arith.constant 0 : i32
    %c0_i32_0 = arith.constant 0 : i32
    %c0_i32_1 = arith.constant 0 : i32
    return %c0_i32, %c0_i32_0 : i32, i32
  }
  func.func @transform_5(%arg0: i32, %arg1: i32) -> (i32, i32) {
    %c0_i32 = arith.constant 0 : i32
    %c0_i32_0 = arith.constant 0 : i32
    %c0_i32_1 = arith.constant 0 : i32
    return %c0_i32, %c0_i32_0 : i32, i32
  }
  func.func @transform_6(%arg0: i32, %arg1: i32) -> (i32, i32, i32) {
    %c0_i32 = arith.constant 0 : i32
    %c0_i32_0 = arith.constant 0 : i32
    %c0_i32_1 = arith.constant 0 : i32
    return %arg0, %c0_i32, %c0_i32_0 : i32, i32, i32
  }
}

</mosaic_0001>

<bundles_post_ra>
// kernel: tpu_custom_call.1
= control target key start
LH: loop header
LB: loop body
LE: loop exit
PB: predicated region body
PF: predicated region fallthrough
CT: control target
= control target key end

     0   :  { %11 = vsyncpa [#allocation3], 0  ;;  %s4297_s0 = inlined_call_operand.vmem [shape: f32[2,512,3], index: 0, kind: input, shape index: {}]   ;;  %s4298_s1 = inlined_call_operand.vmem [shape: f32[3,64], index: 1, kind: input, shape index: {}]   ;;  %s4299_s2 = inlined_call_operand.vmem [shape: f32[1,64], index: 2, kind: input, shape index: {}]   ;;  %s4300_s3 = inlined_call_operand.vmem [shape: bf16[64,128], index: 3, kind: input, shape index: {}]   ;;  %s4301_s4 = inlined_call_operand.vmem [shape: f32[1,128], index: 4, kind: input, shape index: {}]   ;;  %s4302_s5 = inlined_call_operand.vmem [shape: bf16[128,1024], index: 5, kind: input, shape index: {}]   ;;  %s4303_s6 = inlined_call_operand.hbm [shape: f32[2,1,1024], index: 6, kind: output, shape index: {}]  }
   0x1   :  { %13 = vsyncpa [#allocation3 + $0x1], 0  ;;  %s3354_s21 = smov 0   ;;  %s3356_s22 = smov 0  }
   0x2   :  { %s3358_s23 = smov 0   ;;  %s3360_s24 = smov 0  }
   0x3   :  { %s3362_s25 = smov 0   ;;  %s3364_s26 = smov 0  }
   0x4   :  { %s3366_s27 = smov 0   ;;  %s3368_s28 = smov 0  }
   0x5 LB: > { %s2920_s29 = sadd.s32 4294967295, %s3311_s28   ;;  %s2921_s30 = sadd.s32 4294967294, %s3311_s28   ;;  %s3311_s28 = sphi %s3368_s28, %s19_s28   ;;  %s3307_s27 = sphi %s3366_s27, %s4314_s27   ;;  %s3303_s26 = sphi %s3364_s26, %s4313_s26   ;;  %s3299_s25 = sphi %s3362_s25, %s4312_s25   ;;  %s3295_s24 = sphi %s3360_s24, %s4311_s24   ;;  %s3291_s23 = sphi %s3358_s23, %s4310_s23   ;;  %s3287_s22 = sphi %s3356_s22, %s4309_s22   ;;  %s3283_s21 = sphi %s3354_s21, %s4308_s21  }
   0x6   : > { %s28_s7 = sadd.s32 1, %s3303_s26  ;;  %s31_s8 = sadd.s32 1, %s3307_s27 }
   0x7   : > { %p29_p0 = scmp.ge.s32.totalorder %s28_s7, 2  ;;  %p181_p1 = scmp.ne.s32.totalorder %s3291_s23, %s3287_s22 }
   0x8   : > { %p182_p2 = scmp.eq.s32.totalorder %s2920_s29, 3  ;;  %p187_p4 = scmp.ne.s32.totalorder %s3287_s22, %s3283_s21 }
   0x9   : > { %s4316_s7 = smov (%p29_p0, %s28_s7), 0  ;;  %s4318_s8 = smov (!%p29_p0, %s31_s8), %s3307_s27 }
   0xa   : > { %p3403_p3 = por %p182_p2, %p181_p1  ;;  %p33_p5 = scmp.ge.s32.totalorder %s4318_s8, 2 }
   0xb   : > { %p188_p6 = scmp.eq.s32.totalorder %s2921_s30, 3  ;;  %p2924_p7 = scmp.ge.s32.totalorder %s3311_s28, 1 }
   0xc   : > { %p234_p8 = scmp.lt.s32.totalorder %s3311_s28, 5  ;;  %s4320_s8 = smov (%p33_p5, %s4318_s8), 0 }
   0xd   : > { %p3413_p9 = por %p188_p6, %p187_p4  ;;  %s168_s11 = ssub.s32 %s3307_s27, %s4320_s8 }
   0xe   : > { %p235_p10 = pnand %p2924_p7, %p234_p8  ;;  %s171_s12 = sadd.s32 1, %s3291_s23 }
   0xf   : > { %p169_p11 = scmp.eq.s32.totalorder %s168_s11, 0  ;;  %s265_s14 = sand.u32 (!%p235_p10), 1, %s3287_s22  }
  0x10   : > { %238 = sbr.rel (%p235_p10) target bundleno = 1051 (0x41b), region = 44  ;;  %s2926_s15 = sshll.u32 (!%p235_p10), %s3295_s24, 5 }
  0x11   : > { %s3421_s13 = scalar_select %p169_p11, %s3291_s23, %s171_s12  }
  0x12   : > { %s2925_s16 = sshll.u32 (!%p235_p10), %s265_s14, 3  ;;  %p269_p12 = scmp.lt.s32.totalorder (!%p235_p10), %s3299_s25, 1 }
  0x13   : > { %p271_p13 = scmp.lt.s32.totalorder (!%p235_p10), %s2926_s15, 63  ;;  %s3434_s12 = scalar_lea.vmem (!%p235_p10), [#allocation2], %s2925_s16 }
  0x14   : > { %p2929_p0 = scmp.ne.s32.totalorder (!%p235_p10), %s3295_s24, 0 }
  0x17   : > { %s270_s17 = scalar_select %p269_p12, %s3299_s25, 1 }
  0x18   : > { %s4322_s15 = smov (!%p271_p13, %s2926_s15), 63  ;;  %282 = sbr.rel (%p2929_p0) target bundleno = 31 (0x1f), region = 48 }
  0x19   : > { %s2927_s18 = sshll.u32 %s270_s17, 6  ;;  %v3313_v0 = vmov (!%p2929_p0), -inf  }
  0x1a   : > { %s274_s19 = sadd.s32 %s2927_s18, %s4322_s15  ;;  %283 = vst [vmem:[%s3434_s12] sm:$0xff] (!%p2929_p0), %v3313_v0 }
  0x1b   : > { %s2928_s20 = sshll.u32 %s274_s19, 3 }
  0x1c   : > { %s3432_s11 = scalar_lea.vmem %s4297_s0, %s2928_s20 }
  0x1f PF: > { %v286_v1 = vld [vmem:[%s3432_s11 + $0x10] sm:$0xff]  ;;  %v284_v2 = vld [vmem:[%s3432_s11] sm:$0xff]  ;;  %v3314_v3 = vmov 1   ;;  %v285_v4 = vld [vmem:[%s3432_s11 + $0x8] sm:$0xff]  ;;  %v3315_v5 = vmov 2   ;;  %v3316_v8 = vmov 0   ;;  %v477_v38 = vlaneseq }
  0x20   : > { %3168 = vset.pattern.permute.xlu0 %v3314_v3  ;;  %3166 = vset.pattern.permute.xlu1 %v3314_v3  ;;  %v288_v6 = vld [vmem:[%s3432_s11 + $0x20] sm:$0xff]  ;;  %v287_v7 = vld [vmem:[%s3432_s11 + $0x18] sm:$0xff]  ;;  %v3450_v10 = vld [vmem:[%s3432_s11 + $0x48] sm:$0xff]  ;;  %vm1031_vm0 = vcmask 523264   ;;  %s2844_s17 = sshll.u32 %s3434_s12, 4  ;;  %s3318_s30 = smov [#allocation2]   ;;  %s4238_s17 = int_to_ptr.vmem [resolvable:$true] %s2844_s17 }
  0x21   : > { %522 = vperm.xlu0 %3168, %v286_v1   ;;  %514 = vperm.xlu1 %3166, %v284_v2   ;;  %v291_v9 = vld [vmem:[%s3432_s11 + $0x38] sm:$0xff]  ;;  %v3213_v11 = vld [vmem:[%s4300_s3] sm:$0xff]   ;;  %v3214_v12 = vld [vmem:[%s4300_s3 + $0x8] sm:$0xff]   ;;  %v3546_v42 = vshrl.u32 %v477_v38, 7  ;;  %vm4215_vm1 = vcmp.lt.s32.totalorder %v477_v38, 256  ;;  %s3217_s29 = scalar_lea.vmem %s4238_s17, 128 }
  0x22   : > { %3042 = vmatprep.subr.bf16.mxu0 %v3213_v11  ;;  %3082 = vmatprep.subr.bf16.mxu1 %v3213_v11  ;;  %v289_v13 = vld [vmem:[%s3432_s11 + $0x28] sm:$0xff]  ;;  %v3215_v14 = vld [vmem:[%s4300_s3 + $0x10] sm:$0xff]   ;;  %v3216_v15 = vld [vmem:[%s4300_s3 + $0x18] sm:$0xff]   ;;  %p3218_p1 = scmp.ne.s32.totalorder %s4238_s17, %s3217_s29  ;;  %s3221_s24 = sshll.u32 %s3318_s30, 4  ;;  %s3222_s24 = int_to_ptr.vmem [resolvable:$false] %s3221_s24 }
  0x23   : > { %3043 = vmatpush3.bf16.msra.mxu0 %v3213_v11  ;;  %3086 = vmatpush3.bf16.msra.mxu1 %v3213_v11  ;;  %v294_v16 = vld [vmem:[%s3432_s11 + $0x50] sm:$0xff]  ;;  %v296_v18 = vld [vmem:[%s3432_s11 + $0x60] sm:$0xff]  ;;  %v3476_v19 = vld [vmem:[%s3432_s11 + $0x88] sm:$0xff]  ;;  %v643_v46 = vsub.s32 1, %v3546_v42  ;;  %v839_v48 = vsub.s32 2, %v3546_v42  ;;  %v479_v49 = vsub.s32 0, %v3546_v42  ;;  %p3224_p5 = scmp.lt.s32.totalorder %s4238_s17, %s3222_s24 }
  0x24   : > { %3044 = vmatprep.subr.bf16.mxu0 %v3214_v12  ;;  %3083 = vmatprep.subr.bf16.mxu1 %v3214_v12  ;;  %v290_v17 = vld [vmem:[%s3432_s11 + $0x30] sm:$0xff]  ;;  %v292_v21 = vld [vmem:[%s3432_s11 + $0x40] sm:$0xff]  ;;  %v297_v22 = vld [vmem:[%s3432_s11 + $0x68] sm:$0xff]  ;;  %p3219_p2 = pnand %p3218_p1, %p3403_p3  ;;  %s3223_s15 = scalar_lea.vmem %s3222_s24, 256 }
  0x25   : > { %3171 = vset.pattern.permute.xlu0 %v3315_v5  ;;  %518 = vperm.xlu1 %3166, %v285_v4   ;;  %v3481_v20 = vld [vmem:[%s3432_s11 + $0x90] sm:$0xff]  ;;  %v295_v24 = vld [vmem:[%s3432_s11 + $0x58] sm:$0xff]  ;;  %v3496_v25 = vld [vmem:[%s3432_s11 + $0xa8] sm:$0xff]  ;;  %p3225_p6 = scmp.lt.s32.totalorder %s3223_s15, %s3217_s29 }
  0x26   : > { %714 = vperm.xlu0 %3171, %v285_v4   ;;  %v298_v23 = vld [vmem:[%s3432_s11 + $0x70] sm:$0xff]  ;;  %v299_v27 = vld [vmem:[%s3432_s11 + $0x78] sm:$0xff]  ;;  %v3510_v28 = vld [vmem:[%s3432_s11 + $0xa0] sm:$0xff]  ;;  %p3220_p4 = pneg %p3219_p2 }
  0x27   : > { %3045 = vmatpush3.bf16.msra.mxu0 %v3214_v12  ;;  %3087 = vmatpush3.bf16.msra.mxu1 %v3214_v12  ;;  %v3501_v26 = vld [vmem:[%s3432_s11 + $0xb0] sm:$0xff]  ;;  %v3514_v29 = vld [vmem:[%s3432_s11 + $0xb8] sm:$0xff]  ;;  %v3519_v30 = vld [vmem:[%s3432_s11 + $0xc8] sm:$0xff]  ;;  %p3226_p7 = por %p3225_p6, %p3224_p5 }
  0x28   : > { %3046 = vmatprep.subr.bf16.mxu0 %v3215_v14  ;;  %3084 = vmatprep.subr.bf16.mxu1 %v3215_v14  ;;  %v3528_v31 = vld [vmem:[%s3432_s11 + $0xd0] sm:$0xff]  ;;  %v3533_v32 = vld [vmem:[%s3432_s11 + $0xe0] sm:$0xff]  ;;  %v3541_v39 = vld [vmem:[%s3432_s11 + $0xe8] sm:$0xff] }
  0x29   : > { %3167 = vset.pattern.permute.xlu1 %v3316_v8  ;;  %v300_v37 = vld [vmem:[%s3432_s11 + $0x80] sm:$0xff]  ;;  %v3551_v43 = vld [vmem:[%s3432_s11 + $0xf0] sm:$0xff]  ;;  %v303_v53 = vld [vmem:[%s3432_s11 + $0x98] sm:$0xff]  ;;  %p3227_p8 = pnand %p3226_p7, %p3220_p4 }
  0x2a   : > { %726 = vperm.xlu0 %3171, %v288_v6   ;;  %334 = vperm.xlu1 %3167, %v287_v7   ;;  %v316_v47 = vld [vmem:[%s4298_s1] sm:$0x7]  ;;  %v3578_v60 = vld [vmem:[%s3432_s11 + $0xf8] sm:$0xff] }
  0x2b   : > { %3047 = vmatpush3.bf16.msra.mxu0 %v3215_v14  ;;  %3088 = vmatpush3.bf16.msra.mxu1 %v3215_v14  ;;  %v3565_v51 = vrot.slane %v316_v47, %v643_v46  ;;  %v3570_v54 = vrot.slane %v316_v47, %v839_v48  ;;  %v3572_v55 = vrot.slane %v316_v47, %v479_v49 }
  0x2c   : > { %3048 = vmatprep.subr.bf16.mxu0 %v3216_v15  ;;  %3085 = vmatprep.subr.bf16.mxu1 %v3216_v15 }
  0x2e   : > { %738 = vperm.xlu0 %3171, %v291_v9   ;;  %3169 = vset.pattern.permute.xlu1 %v3314_v3 }
  0x2f   : > { %526 = vperm.xlu1 %3169, %v287_v7   ;;  %3049 = vmatpush3.bf16.msra.mxu0 %v3216_v15 }
  0x30   : > { %3089 = vmatpush3.bf16.msra.mxu1 %v3216_v15 }
  0x32   : > { %746 = vperm.xlu0 %3171, %v3450_v10  }
  0x33   : > { %3170 = vset.pattern.permute.xlu1 %v3315_v5 }
  0x34   : > { %710 = vperm.xlu1 %3170, %v284_v2  }
  0x36   : > { %3182 = vset.pattern.permute.xlu0 %v3316_v8 }
  0x37   : > { %319 = vperm.xlu0 %3182, %v284_v2  }
  0x38   : > { %718 = vperm.xlu1 %3170, %v286_v1  }
  0x3b   : > { %324 = vperm.xlu0 %3182, %v285_v4  }
  0x3c   : > { %722 = vperm.xlu1 %3170, %v287_v7  }
  0x3f   : > { %329 = vperm.xlu0 %3182, %v286_v1  }
  0x40   : > { %3172 = vset.pattern.permute.xlu1 %v3316_v8 }
  0x41   : > { %344 = vperm.xlu1 %3172, %v289_v13  }
  0x43   : > { %339 = vperm.xlu0 %3182, %v288_v6  }
  0x45   : > { %3173 = vset.pattern.permute.xlu1 %v3314_v3 }
  0x46   : > { %530 = vperm.xlu1 %3173, %v288_v6  }
  0x47   : > { %364 = vperm.xlu0 %3182, %v3450_v10  }
  0x4a   : > { %3174 = vset.pattern.permute.xlu1 %v3316_v8 }
  0x4b   : > { %369 = vperm.xlu0 %3182, %v294_v16   ;;  %349 = vperm.xlu1 %3174, %v290_v17  }
  0x4f   : > { %379 = vperm.xlu0 %3182, %v296_v18   ;;  %354 = vperm.xlu1 %3174, %v291_v9  }
  0x53   : > { %404 = vperm.xlu0 %3182, %v3476_v19   ;;  %3175 = vset.pattern.permute.xlu1 %v3314_v3 }
  0x54   : > { %542 = vperm.xlu1 %3175, %v291_v9  }
  0x57   : > { %409 = vperm.xlu0 %3182, %v3481_v20  }
  0x58   : > { %3176 = vset.pattern.permute.xlu1 %v3315_v5 }
  0x59   : > { %730 = vperm.xlu1 %3176, %v289_v13  }
  0x5b   : > { %3190 = vset.pattern.permute.xlu0 %v3314_v3 }
  0x5c   : > { %534 = vperm.xlu0 %3190, %v289_v13  }
  0x5d   : > { %734 = vperm.xlu1 %3176, %v290_v17  }
  0x60   : > { %538 = vperm.xlu0 %3190, %v290_v17  }
  0x61   : > { %3177 = vset.pattern.permute.xlu1 %v3316_v8 }
  0x62   : > { %359 = vperm.xlu1 %3177, %v292_v21  }
  0x64   : > { %554 = vperm.xlu0 %3190, %v294_v16  }
  0x66   : > { %3178 = vset.pattern.permute.xlu1 %v3314_v3 }
  0x67   : > { %546 = vperm.xlu1 %3178, %v292_v21  }
  0x68   : > { %566 = vperm.xlu0 %3190, %v297_v22  }
  0x6b   : > { %550 = vperm.xlu1 %3178, %v3450_v10   ;;  %v3591_v10 = vld [vmem:[%s4299_s2] ss:$0 sm:$0xff] }
  0x6c   : > { %570 = vperm.xlu0 %3190, %v298_v23  }
  0x6f   : > { %3179 = vset.pattern.permute.xlu1 %v3316_v8 }
  0x70   : > { %374 = vperm.xlu1 %3179, %v295_v24   ;;  %586 = vperm.xlu0 %3190, %v3481_v20  }
  0x74   : > { %3180 = vset.pattern.permute.xlu1 %v3314_v3  ;;  %598 = vperm.xlu0 %3190, %v3496_v25  }
  0x75   : > { %558 = vperm.xlu1 %3180, %v295_v24  }
  0x78   : > { %602 = vperm.xlu0 %3190, %v3501_v26  }
  0x79   : > { %3181 = vset.pattern.permute.xlu1 %v3315_v5 }
  0x7a   : > { %742 = vperm.xlu1 %3181, %v292_v21  }
  0x7c   : > { %3197 = vset.pattern.permute.xlu0 %v3315_v5 }
  0x7d   : > { %758 = vperm.xlu0 %3197, %v296_v18  }
  0x7e   : > { %750 = vperm.xlu1 %3181, %v294_v16  }
  0x81   : > { %770 = vperm.xlu0 %3197, %v299_v27  }
  0x82   : > { %754 = vperm.xlu1 %3181, %v295_v24  }
  0x85   : > { %778 = vperm.xlu0 %3197, %v3476_v19  }
  0x86   : > { %3183 = vset.pattern.permute.xlu1 %v3316_v8 }
  0x87   : > { %384 = vperm.xlu1 %3183, %v297_v22  }
  0x89   : > { %790 = vperm.xlu0 %3197, %v3510_v28  }
  0x8b   : > { %3184 = vset.pattern.permute.xlu1 %v3314_v3 }
  0x8c   : > { %562 = vperm.xlu1 %3184, %v296_v18  }
  0x8d   : > { %802 = vperm.xlu0 %3197, %v3514_v29  }
  0x90   : > { %3185 = vset.pattern.permute.xlu1 %v3316_v8 }
  0x91   : > { %389 = vperm.xlu1 %3185, %v298_v23   ;;  %810 = vperm.xlu0 %3197, %v3519_v30  }
  0x95   : > { %394 = vperm.xlu1 %3185, %v299_v27   ;;  %3205 = vset.pattern.permute.xlu0 %v3316_v8 }
  0x96   : > { %419 = vperm.xlu0 %3205, %v3510_v28  }
  0x99   : > { %3186 = vset.pattern.permute.xlu1 %v3314_v3 }
  0x9a   : > { %574 = vperm.xlu1 %3186, %v299_v27   ;;  %444 = vperm.xlu0 %3205, %v3519_v30  }
  0x9e   : > { %3187 = vset.pattern.permute.xlu1 %v3315_v5  ;;  %449 = vperm.xlu0 %3205, %v3528_v31  }
  0x9f   : > { %762 = vperm.xlu1 %3187, %v297_v22  }
  0xa0   : > { %v515_v33 = vpop.permute.xlu1 %514  ;;  %v523_v34 = vpop.permute.xlu0 %522 }
  0xa1   : > { %v645_v57 = vmul.f32 %v3565_v51, %v515_v33  ;;  %v647_v12 = vmul.f32 %v3565_v51, %v523_v34 }
  0xa2   : > { %459 = vperm.xlu0 %3205, %v3533_v32  }
  0xa3   : > { %766 = vperm.xlu1 %3187, %v298_v23  }
  0xa4   : > { %v519_v35 = vpop.permute.xlu1 %518 }
  0xa5   : > { %v715_v36 = vpop.permute.xlu0 %714  ;;  %v646_v0 = vmul.f32 %v3565_v51, %v519_v35 }
  0xa6   : > { %3206 = vset.pattern.permute.xlu0 %v3314_v3  ;;  %v842_v2 = vmul.f32 %v3570_v54, %v715_v36 }
  0xa7   : > { %3188 = vset.pattern.permute.xlu1 %v3316_v8  ;;  %618 = vperm.xlu0 %3206, %v3528_v31  }
  0xa8   : > { %399 = vperm.xlu1 %3188, %v300_v37  }
  0xa9   : > { %v335_v40 = vpop.permute.xlu1 %334  ;;  %v3543_v41 = vpop.permute.xlu0 %726 }
  0xaa   : > { %v484_v4 = vmul.f32 %v3572_v55, %v335_v40 }
  0xab   : > { %630 = vperm.xlu0 %3206, %v3541_v39  }
  0xac   : > { %3189 = vset.pattern.permute.xlu1 %v3314_v3 }
  0xad   : > { %578 = vperm.xlu1 %3189, %v300_v37   ;;  %v3553_v44 = vpop.permute.xlu0 %738 }
  0xae   : > { %v527_v45 = vpop.permute.xlu1 %526 }
  0xaf   : > { %634 = vperm.xlu0 %3206, %v3551_v43   ;;  %v648_v61 = vmul.f32 %v3565_v51, %v527_v45 }
  0xb1   : > { %582 = vperm.xlu1 %3189, %v3476_v19   ;;  %v3563_v50 = vpop.permute.xlu0 %746  ;;  %v680_v13 = vadd.f32 %v648_v61, %v484_v4  ;;  %v848_v4 = vmul.f32 %v3570_v54, %v3553_v44 }
  0xb3   : > { %v711_v52 = vpop.permute.xlu1 %710  ;;  %3211 = vset.pattern.permute.xlu0 %v3315_v5 }
  0xb4   : > { %822 = vperm.xlu0 %3211, %v3533_v32   ;;  %v841_v62 = vmul.f32 %v3570_v54, %v711_v52 }
  0xb5   : > { %3191 = vset.pattern.permute.xlu1 %v3316_v8 }
  0xb6   : > { %v320_v56 = vpop.permute.xlu0 %319  ;;  %414 = vperm.xlu1 %3191, %v303_v53  }
  0xb7   : > { %v481_v58 = vmul.f32 %v3572_v55, %v320_v56  ;;  %v719_v59 = vpop.permute.xlu1 %718 }
  0xb8   : > { %834 = vperm.xlu0 %3211, %v3578_v60   ;;  %v843_v22 = vmul.f32 %v3570_v54, %v719_v59 }
  0xb9   : > { %v677_v63 = vadd.f32 %v645_v57, %v481_v58 }
  0xba   : > { %v325_v1 = vpop.permute.xlu0 %324  ;;  %3192 = vset.pattern.permute.xlu1 %v3314_v3 }
  0xbb   : > { %v873_v6 = vadd.f32 %v841_v62, %v677_v63  ;;  %v482_v7 = vmul.f32 %v3572_v55, %v325_v1  ;;  %590 = vperm.xlu1 %3192, %v303_v53   ;;  %v723_v9 = vpop.permute.xlu1 %722  ;;  %v845_v63 = vmul.f32 %v3570_v54, %v3543_v41 }
  0xbc   : > { %v844_v11 = vmul.f32 %v3570_v54, %v723_v9 }
  0xbd   : > { %v678_v14 = vadd.f32 %v646_v0, %v482_v7  ;;  %v912_v19 = vadd.f32 %v3591_v10, %v873_v6 }
  0xbe   : > { %v330_v15 = vpop.permute.xlu0 %329  ;;  %v876_v17 = vadd.f32 %v844_v11, %v680_v13 }
  0xbf   : > { %v874_v16 = vadd.f32 %v842_v2, %v678_v14  ;;  %v483_v18 = vmul.f32 %v3572_v55, %v330_v15  ;;  %3193 = vset.pattern.permute.xlu1 %v3315_v5  ;;  %v944_v35 = vmax.f32 %v912_v19, 0.0 }
  0xc0   : > { %774 = vperm.xlu1 %3193, %v300_v37   ;;  %v345_v21 = vpop.permute.xlu1 %344  ;;  %v915_v33 = vadd.f32 %v3591_v10, %v876_v17 }
  0xc1   : > { %v679_v23 = vadd.f32 %v647_v12, %v483_v18  ;;  %v913_v24 = vadd.f32 %v3591_v10, %v874_v16  ;;  %v486_v7 = vmul.f32 %v3572_v55, %v345_v21 }
  0xc2   : > { %v340_v27 = vpop.permute.xlu0 %339  ;;  %v947_v47 = vmax.f32 %v915_v33, 0.0 }
  0xc3   : > { %v875_v34 = vadd.f32 %v843_v22, %v679_v23  ;;  %v945_v36 = vmax.f32 %v913_v24, 0.0  ;;  %v485_v59 = vmul.f32 %v3572_v55, %v340_v27 }
  0xc4   : > { %782 = vperm.xlu1 %3193, %v3481_v20  }
  0xc5   : > { %v914_v40 = vadd.f32 %v3591_v10, %v875_v34  ;;  %v531_v45 = vpop.permute.xlu1 %530  ;;  %v976_v46 = vpack.c.bf16 %v945_v36, %v944_v35 }
  0xc6   : > { %v3603_v37 = vpop.permute.xlu0 %364  ;;  %v649_v61 = vmul.f32 %v3565_v51, %v531_v45 }
  0xc7   : > { %v946_v48 = vmax.f32 %v914_v40, 0.0  ;;  %3050 = vmatprep.mubr.msk.bf16.mxu0 %vm1031_vm0, %v976_v46 }
  0xc8   : > { %786 = vperm.xlu1 %3193, %v303_v53   ;;  %v681_v0 = vadd.f32 %v649_v61, %v485_v59 }
  0xc9   : > { %v977_v49 = vpack.c.bf16 %v947_v47, %v946_v48 }
  0xca   : > { %v350_v52 = vpop.permute.xlu1 %349  ;;  %v3606_v56 = vpop.permute.xlu0 %369  ;;  %v877_v9 = vadd.f32 %v845_v63, %v681_v0 }
  0xcb   : > { %3051 = vmatmul.mubr.msk.bf16.vlgmr.msra.gmra.mrb[0].mxu0 %vm1031_vm0, %v977_v49  ;;  %v487_v15 = vmul.f32 %v3572_v55, %v350_v52  ;;  %v308_v49 = vld [vmem:[%s3432_s11 + $0xc0] sm:$0xff]  ;;  %v491_v0 = vmul.f32 %v3572_v55, %v3606_v56 }
  0xcc   : > { %3194 = vset.pattern.permute.xlu1 %v3316_v8  ;;  %v916_v44 = vadd.f32 %v3591_v10, %v877_v9 }
  0xcd   : > { %424 = vperm.xlu1 %3194, %v3496_v25  }
  0xce   : > { %v355_v20 = vpop.permute.xlu1 %354  ;;  %v3611_v57 = vpop.permute.xlu0 %379  ;;  %v948_v27 = vmax.f32 %v916_v44, 0.0 }
  0xcf   : > { %v488_v2 = vmul.f32 %v3572_v55, %v355_v20 }
  0xd1   : > { %3195 = vset.pattern.permute.xlu1 %v3314_v3 }
  0xd2   : > { %594 = vperm.xlu1 %3195, %v3510_v28   ;;  %v3615_v58 = vpop.permute.xlu0 %404 }
  0xd3   : > { %v543_v53 = vpop.permute.xlu1 %542 }
  0xd4   : > { %v652_v1 = vmul.f32 %v3565_v51, %v543_v53 }
  0xd6   : > { %3196 = vset.pattern.permute.xlu1 %v3316_v8  ;;  %v3620_v62 = vpop.permute.xlu0 %409  ;;  %v684_v11 = vadd.f32 %v652_v1, %v488_v2 }
  0xd7   : > { %429 = vperm.xlu1 %3196, %v3501_v26  }
  0xd8   : > { %v731_v28 = vpop.permute.xlu1 %730  ;;  %v880_v17 = vadd.f32 %v848_v4, %v684_v11 }
  0xd9   : > { %v846_v41 = vmul.f32 %v3570_v54, %v731_v28 }
  0xda   : > { %v919_v33 = vadd.f32 %v3591_v10, %v880_v17 }
  0xdb   : > { %v535_v6 = vpop.permute.xlu0 %534  ;;  %434 = vperm.xlu1 %3196, %v3514_v29  }
  0xdc   : > { %v650_v12 = vmul.f32 %v3565_v51, %v535_v6  ;;  %v735_v13 = vpop.permute.xlu1 %734  ;;  %v951_v45 = vmax.f32 %v919_v33, 0.0  ;;  %v311_v6 = vld [vmem:[%s3432_s11 + $0xd8] sm:$0xff]  ;;  %v1677_v33 = vld [vmem:[%s4302_s5 + $0x8] sm:$0xff]  ;;  %s3021_s11 = sshll.u32 %s3299_s25, 7  ;;  %s2830_s25 = scalar_lea.sflag [#allocation3], %s265_s14 }
  0xdd   : > { %v847_v23 = vmul.f32 %v3570_v54, %v735_v13  ;;  %s4236_s20 = scalar_lea.hbm %s4303_s6, %s3021_s11 }
  0xde   : > { %v682_v14 = vadd.f32 %v650_v12, %v486_v7 }
  0xdf   : > { %v539_v16 = vpop.permute.xlu0 %538  ;;  %3198 = vset.pattern.permute.xlu1 %v3314_v3 }
  0xe0   : > { %v878_v18 = vadd.f32 %v846_v41, %v682_v14  ;;  %v651_v19 = vmul.f32 %v3565_v51, %v539_v16  ;;  %606 = vperm.xlu1 %3198, %v3514_v29  }
  0xe1   : > { %v360_v21 = vpop.permute.xlu1 %359 }
  0xe2   : > { %v917_v22 = vadd.f32 %v3591_v10, %v878_v18  ;;  %v683_v24 = vadd.f32 %v651_v19, %v487_v15 }
  0xe3   : > { %v555_v53 = vpop.permute.xlu0 %554 }
  0xe4   : > { %v949_v34 = vmax.f32 %v917_v22, 0.0  ;;  %v879_v35 = vadd.f32 %v847_v23, %v683_v24  ;;  %3199 = vset.pattern.permute.xlu1 %v3315_v5  ;;  %v655_v28 = vmul.f32 %v3565_v51, %v555_v53 }
  0xe5   : > { %794 = vperm.xlu1 %3199, %v3496_v25   ;;  %v490_v25 = vmul.f32 %v3572_v55, %v3603_v37  ;;  %v489_v37 = vmul.f32 %v3572_v55, %v360_v21 }
  0xe6   : > { %v918_v36 = vadd.f32 %v3591_v10, %v879_v35  ;;  %v547_v40 = vpop.permute.xlu1 %546  ;;  %v978_v29 = vpack.c.bf16 %v949_v34, %v948_v27  ;;  %v1678_v34 = vld [vmem:[%s4302_s5 + $0x28] sm:$0xff] }
  0xe7   : > { %v653_v63 = vmul.f32 %v3565_v51, %v547_v40  ;;  %v3661_v2 = vpop.permute.xlu0 %566  ;;  %v2969_v40 = vcombine.high %v1677_v33, %v1678_v34 }
  0xe8   : > { %v950_v46 = vmax.f32 %v918_v36, 0.0  ;;  %3054 = vmatprep.mubr.msk.bf16.mxu0 %vm1031_vm0, %v978_v29  ;;  %v2968_v29 = vcombine.low %v1677_v33, %v1678_v34  ;;  %v1690_v34 = vld [vmem:[%s4302_s5 + $0x1a8] sm:$0xff] }
  0xe9   : > { %798 = vperm.xlu1 %3199, %v3501_v26   ;;  %v850_v26 = vmul.f32 %v3570_v54, %v3563_v50  ;;  %v685_v7 = vadd.f32 %v653_v63, %v489_v37  ;;  %1773 = vmatprep.subr.bf16.mxu0 %v2969_v40  ;;  %v1683_v37 = vld [vmem:[%s4302_s5 + $0xc8] sm:$0xff] }
  0xea   : > { %v551_v47 = vpop.permute.xlu1 %550  ;;  %v979_v48 = vpack.c.bf16 %v951_v45, %v950_v46  ;;  %1774 = vmatpush1.bf16.msra.mxu0 %v2968_v29 }
  0xeb   : > { %v654_v20 = vmul.f32 %v3565_v51, %v551_v47  ;;  %v3669_v41 = vpop.permute.xlu0 %570  ;;  %v1679_v47 = vld [vmem:[%s4302_s5 + $0x48] sm:$0xff] }
  0xec   : > { %3055 = vmatmul.mubr.msk.bf16.gmra.mrb[4].mxu0 %vm1031_vm0, %v979_v48  ;;  %v1680_v48 = vld [vmem:[%s4302_s5 + $0x68] sm:$0xff] }
  0xed   : > { %3200 = vset.pattern.permute.xlu1 %v3316_v8  ;;  %v686_v59 = vadd.f32 %v654_v20, %v490_v25  ;;  %v2970_v53 = vcombine.low %v1679_v47, %v1680_v48 }
  0xee   : > { %439 = vperm.xlu1 %3200, %v308_v49  }
  0xef   : > { %v375_v52 = vpop.permute.xlu1 %374  ;;  %v882_v1 = vadd.f32 %v850_v26, %v686_v59  ;;  %v3676_v24 = vpop.permute.xlu0 %586  ;;  %v1681_v26 = vld [vmem:[%s4302_s5 + $0x88] sm:$0xff] }
  0xf0   : > { %v492_v16 = vmul.f32 %v3572_v55, %v375_v52  ;;  %v1682_v59 = vld [vmem:[%s4302_s5 + $0xa8] sm:$0xff] }
  0xf1   : > { %v921_v9 = vadd.f32 %v3591_v10, %v882_v1  ;;  %v2972_v63 = vcombine.low %v1681_v26, %v1682_v59  ;;  %v1684_v1 = vld [vmem:[%s4302_s5 + $0xe8] sm:$0xff] }
  0xf2   : > { %3201 = vset.pattern.permute.xlu1 %v3314_v3 }
  0xf3   : > { %610 = vperm.xlu1 %3201, %v308_v49   ;;  %v953_v15 = vmax.f32 %v921_v9, 0.0  ;;  %v3693_v25 = vpop.permute.xlu0 %598  ;;  %v1685_v9 = vld [vmem:[%s4302_s5 + $0x108] sm:$0xff] }
  0xf4   : > { %v559_v61 = vpop.permute.xlu1 %558 }
  0xf5   : > { %v656_v12 = vmul.f32 %v3565_v51, %v559_v61  ;;  %v2973_v61 = vcombine.high %v1681_v26, %v1682_v59  ;;  %v1691_v26 = vld [vmem:[%s4302_s5 + $0x1c8] sm:$0xff] }
  0xf6   : > { %v1692_v59 = vld [vmem:[%s4302_s5 + $0x1e8] sm:$0xff] }
  0xf7   : > { %614 = vperm.xlu1 %3201, %v3519_v30   ;;  %v687_v30 = vadd.f32 %v655_v28, %v491_v0  ;;  %v688_v19 = vadd.f32 %v656_v12, %v492_v16  ;;  %v3703_v0 = vpop.permute.xlu0 %602  ;;  %v2975_v28 = vcombine.high %v1683_v37, %v1684_v1  ;;  %v1688_v16 = vld [vmem:[%s4302_s5 + $0x168] sm:$0xff] }
  0xf9   : > { %v743_v4 = vpop.permute.xlu1 %742 }
  0xfa   : > { %v849_v50 = vmul.f32 %v3570_v54, %v743_v4  ;;  %v2974_v4 = vcombine.low %v1683_v37, %v1684_v1 }
  0xfb   : > { %3202 = vset.pattern.permute.xlu1 %v3316_v8 }
  0xfc   : > { %v881_v11 = vadd.f32 %v849_v50, %v685_v7  ;;  %454 = vperm.xlu1 %3202, %v311_v6   ;;  %v493_v7 = vmul.f32 %v3572_v55, %v3611_v57 }
  0xfd   : > { %v751_v56 = vpop.permute.xlu1 %750 }
  0xfe   : > { %v920_v13 = vadd.f32 %v3591_v10, %v881_v11  ;;  %v851_v14 = vmul.f32 %v3570_v54, %v751_v56  ;;  %v759_v11 = vpop.permute.xlu0 %758 }
 0x100   : > { %v952_v44 = vmax.f32 %v920_v13, 0.0  ;;  %v883_v17 = vadd.f32 %v851_v14, %v687_v30  ;;  %3203 = vset.pattern.permute.xlu1 %v3314_v3  ;;  %v1686_v30 = vld [vmem:[%s4302_s5 + $0x128] sm:$0xff]  ;;  %v853_v13 = vmul.f32 %v3570_v54, %v759_v11 }
 0x101   : > { %622 = vperm.xlu1 %3203, %v311_v6   ;;  %v755_v18 = vpop.permute.xlu1 %754  ;;  %v2977_v56 = vcombine.high %v1685_v9, %v1686_v30  ;;  %v2976_v12 = vcombine.low %v1685_v9, %v1686_v30 }
 0x102   : > { %v980_v21 = vpack.c.bf16 %v953_v15, %v952_v44  ;;  %v852_v22 = vmul.f32 %v3570_v54, %v755_v18  ;;  %v922_v23 = vadd.f32 %v3591_v10, %v883_v17  ;;  %v1687_v15 = vld [vmem:[%s4302_s5 + $0x148] sm:$0xff]  ;;  %v658_v44 = vmul.f32 %v3565_v51, %v3661_v2  ;;  %v771_v18 = vpop.permute.xlu0 %770 }
 0x103   : > { %v856_v33 = vmul.f32 %v3570_v54, %v771_v18  ;;  %v1689_v2 = vld [vmem:[%s4302_s5 + $0x188] sm:$0xff] }
 0x104   : > { %v884_v27 = vadd.f32 %v852_v22, %v688_v19  ;;  %3058 = vmatprep.mubr.msk.bf16.mxu0 %vm1031_vm0, %v980_v21  ;;  %v954_v45 = vmax.f32 %v922_v23, 0.0  ;;  %v2979_v19 = vcombine.high %v1687_v15, %v1688_v16  ;;  %v2978_v22 = vcombine.low %v1687_v15, %v1688_v16 }
 0x105   : > { %3204 = vset.pattern.permute.xlu1 %v3315_v5  ;;  %v2981_v29 = vcombine.high %v1689_v2, %v1690_v34  ;;  %v498_v16 = vmul.f32 %v3572_v55, %v3615_v58 }
 0x106   : > { %v923_v35 = vadd.f32 %v3591_v10, %v884_v27  ;;  %806 = vperm.xlu1 %3204, %v308_v49   ;;  %v385_v36 = vpop.permute.xlu1 %384  ;;  %v2971_v49 = vcombine.high %v1679_v47, %v1680_v48  ;;  %v779_v15 = vpop.permute.xlu0 %778 }
 0x107   : > { %v494_v17 = vmul.f32 %v3572_v55, %v385_v36 }
 0x108   : > { %v955_v46 = vmax.f32 %v923_v35, 0.0  ;;  %1775 = vmatprep.subr.bf16.mxu0 %v2971_v49  ;;  %v659_v35 = vmul.f32 %v3565_v51, %v3669_v41 }
 0x109   : > { %1776 = vmatpush1.bf16.msra.mxu0 %v2970_v53  ;;  %v690_v36 = vadd.f32 %v658_v44, %v494_v17 }
 0x10a   : > { %v981_v52 = vpack.c.bf16 %v955_v46, %v954_v45  ;;  %814 = vperm.xlu1 %3204, %v3528_v31   ;;  %1777 = vmatprep.subr.bf16.mxu0 %v2973_v61  ;;  %v3750_v45 = vld [vmem:[%s4302_s5] sm:$0xff] }
 0x10b   : > { %v563_v20 = vpop.permute.xlu1 %562  ;;  %v3755_v46 = vld [vmem:[%s4302_s5 + $0x20] sm:$0xff] }
 0x10c   : > { %3059 = vmatmul.mubr.msk.bf16.gmra.mrb[8].mxu0 %vm1031_vm0, %v981_v52  ;;  %v657_v50 = vmul.f32 %v3565_v51, %v563_v20  ;;  %v2980_v52 = vcombine.low %v1689_v2, %v1690_v34  ;;  %v2953_v41 = vcombine.high %v3750_v45, %v3755_v46 }
 0x10d   : > { %1778 = vmatpush1.bf16.msra.mxu0 %v2972_v63  ;;  %v2983_v63 = vcombine.high %v1691_v26, %v1692_v59 }
 0x10e   : > { %818 = vperm.xlu1 %3204, %v311_v6   ;;  %1779 = vmatprep.subr.bf16.mxu0 %v2975_v28  ;;  %v689_v57 = vadd.f32 %v657_v50, %v493_v7  ;;  %v2982_v28 = vcombine.low %v1691_v26, %v1692_v59 }
 0x10f   : > { %1385 = vmatprep.subr.bf16.mxu1 %v2953_v41 }
 0x110   : > { %v390_v31 = vpop.permute.xlu1 %389  ;;  %v885_v23 = vadd.f32 %v853_v13, %v689_v57 }
 0x111   : > { %1780 = vmatpush1.bf16.msra.mxu0 %v2974_v4  ;;  %v495_v47 = vmul.f32 %v3572_v55, %v390_v31 }
 0x112   : > { %3207 = vset.pattern.permute.xlu1 %v3316_v8  ;;  %1781 = vmatprep.subr.bf16.mxu0 %v2977_v56  ;;  %v924_v49 = vadd.f32 %v3591_v10, %v885_v23 }
 0x113   : > { %464 = vperm.xlu1 %3207, %v3541_v39   ;;  %v691_v31 = vadd.f32 %v659_v35, %v495_v47 }
 0x114   : > { %v395_v6 = vpop.permute.xlu1 %394  ;;  %v956_v4 = vmax.f32 %v924_v49, 0.0 }
 0x115   : > { %1782 = vmatpush1.bf16.msra.mxu0 %v2976_v12  ;;  %v496_v21 = vmul.f32 %v3572_v55, %v395_v6 }
 0x116   : > { %1783 = vmatprep.subr.bf16.mxu0 %v2979_v19 }
 0x117   : > { %3208 = vset.pattern.permute.xlu1 %v3314_v3 }
 0x118   : > { %626 = vperm.xlu1 %3208, %v3533_v32  }
 0x119   : > { %v575_v14 = vpop.permute.xlu1 %574  ;;  %1784 = vmatpush1.bf16.msra.mxu0 %v2978_v22 }
 0x11a   : > { %v660_v32 = vmul.f32 %v3565_v51, %v575_v14  ;;  %1785 = vmatprep.subr.bf16.mxu0 %v2981_v29  ;;  %v791_v29 = vpop.permute.xlu0 %790 }
 0x11c   : > { %3209 = vset.pattern.permute.xlu1 %v3316_v8  ;;  %v692_v27 = vadd.f32 %v660_v32, %v496_v21  ;;  %v663_v21 = vmul.f32 %v3565_v51, %v3676_v24 }
 0x11d   : > { %469 = vperm.xlu1 %3209, %v3551_v43   ;;  %1786 = vmatpush1.bf16.msra.mxu0 %v2980_v52 }
 0x11e   : > { %v763_v40 = vpop.permute.xlu1 %762  ;;  %v888_v20 = vadd.f32 %v856_v33, %v692_v27  ;;  %1787 = vmatprep.subr.bf16.mxu0 %v2983_v63  ;;  %v803_v59 = vpop.permute.xlu0 %802  ;;  %v1291_v63 = vld [vmem:[%s4302_s5 + $0x40] sm:$0xff] }
 0x11f   : > { %v854_v48 = vmul.f32 %v3570_v54, %v763_v40 }
 0x120   : > { %v927_v6 = vadd.f32 %v3591_v10, %v888_v20 }
 0x121   : > { %v886_v53 = vadd.f32 %v854_v48, %v690_v36  ;;  %474 = vperm.xlu1 %3209, %v3578_v60   ;;  %1788 = vmatpush1.bf16.msra.mxu0 %v2982_v28  ;;  %v2952_v28 = vcombine.low %v3750_v45, %v3755_v46  ;;  %v1295_v45 = vld [vmem:[%s4302_s5 + $0xc0] sm:$0xff] }
 0x122   : > { %v767_v61 = vpop.permute.xlu1 %766  ;;  %v959_v56 = vmax.f32 %v927_v6, 0.0  ;;  %v1296_v46 = vld [vmem:[%s4302_s5 + $0xe0] sm:$0xff] }
 0x123   : > { %v925_v37 = vadd.f32 %v3591_v10, %v886_v53  ;;  %v855_v1 = vmul.f32 %v3570_v54, %v767_v61 }
 0x125   : > { %v957_v7 = vmax.f32 %v925_v37, 0.0  ;;  %v887_v50 = vadd.f32 %v855_v1, %v691_v31  ;;  %3210 = vset.pattern.permute.xlu1 %v3314_v3  ;;  %v1292_v31 = vld [vmem:[%s4302_s5 + $0x60] sm:$0xff] }
 0x126   : > { %638 = vperm.xlu1 %3210, %v3578_v60   ;;  %v2955_v6 = vcombine.high %v1291_v63, %v1292_v31 }
 0x127   : > { %v982_v9 = vpack.c.bf16 %v957_v7, %v956_v4  ;;  %v926_v30 = vadd.f32 %v3591_v10, %v887_v50  ;;  %v400_v11 = vpop.permute.xlu1 %399  ;;  %v1293_v50 = vld [vmem:[%s4302_s5 + $0x80] sm:$0xff] }
 0x128   : > { %v497_v32 = vmul.f32 %v3572_v55, %v400_v11  ;;  %v2954_v11 = vcombine.low %v1291_v63, %v1292_v31 }
 0x129   : > { %v958_v12 = vmax.f32 %v926_v30, 0.0  ;;  %3062 = vmatprep.mubr.msk.bf16.mxu0 %vm1031_vm0, %v982_v9  ;;  %v1294_v9 = vld [vmem:[%s4302_s5 + $0xa0] sm:$0xff]  ;;  %v3815_v30 = vpop.permute.xlu0 %810 }
 0x12a   : > { %3212 = vset.pattern.permute.xlu1 %v3315_v5  ;;  %v858_v5 = vmul.f32 %v3570_v54, %v779_v15 }
 0x12b   : > { %v983_v57 = vpack.c.bf16 %v959_v56, %v958_v12  ;;  %826 = vperm.xlu1 %3212, %v3541_v39   ;;  %v2957_v56 = vcombine.high %v1293_v50, %v1294_v9 }
 0x12c   : > { %v579_v13 = vpop.permute.xlu1 %578 }
 0x12d   : > { %3063 = vmatmul.mubr.msk.bf16.gmra.mrb[12].mxu0 %vm1031_vm0, %v983_v57  ;;  %v661_v39 = vmul.f32 %v3565_v51, %v579_v13  ;;  %v2956_v57 = vcombine.low %v1293_v50, %v1294_v9  ;;  %v420_v13 = vpop.permute.xlu0 %419 }
 0x12e   : > { %1805 = vmatprep.mubr.bf16.mxu0 %v3316_v8 }
 0x12f   : > { %830 = vperm.xlu1 %3212, %v3551_v43   ;;  %v499_v43 = vmul.f32 %v3572_v55, %v3620_v62  ;;  %v693_v22 = vadd.f32 %v661_v39, %v497_v32  ;;  %v1299_v39 = vld [vmem:[%s4302_s5 + $0x140] sm:$0xff] }
 0x130   : > { %v583_v3 = vpop.permute.xlu1 %582  ;;  %v1300_v32 = vld [vmem:[%s4302_s5 + $0x160] sm:$0xff] }
 0x131   : > { %v662_v14 = vmul.f32 %v3565_v51, %v583_v3  ;;  %v695_v2 = vadd.f32 %v663_v21, %v499_v43  ;;  %v2959_v3 = vcombine.high %v1295_v45, %v1296_v46 }
 0x133   : > { %v694_v44 = vadd.f32 %v662_v14, %v498_v16  ;;  %v1298_v14 = vld [vmem:[%s4302_s5 + $0x120] sm:$0xff]  ;;  %v501_v16 = vmul.f32 %v3572_v55, %v420_v13 }
 0x135   : > { %v415_v60 = vpop.permute.xlu1 %414  ;;  %v890_v18 = vadd.f32 %v858_v5, %v694_v44  ;;  %v2958_v5 = vcombine.low %v1295_v45, %v1296_v46 }
 0x136   : > { %v500_v40 = vmul.f32 %v3572_v55, %v415_v60  ;;  %v1297_v60 = vld [vmem:[%s4302_s5 + $0x100] sm:$0xff] }
 0x137   : > { %v929_v27 = vadd.f32 %v3591_v10, %v890_v18  ;;  %v861_v18 = vmul.f32 %v3570_v54, %v791_v29  ;;  %v2960_v21 = vcombine.low %v1297_v60, %v1298_v14 }
 0x139   : > { %v961_v24 = vmax.f32 %v929_v27, 0.0 }
 0x13a   : > { %v591_v17 = vpop.permute.xlu1 %590 }
 0x13b   : > { %v664_v34 = vmul.f32 %v3565_v51, %v591_v17  ;;  %v2961_v17 = vcombine.high %v1297_v60, %v1298_v14 }
 0x13d   : > { %v696_v52 = vadd.f32 %v664_v34, %v500_v40  ;;  %v666_v34 = vmul.f32 %v3565_v51, %v3693_v25  ;;  %v1304_v25 = vld [vmem:[%s4302_s5 + $0x1e0] sm:$0xff] }
 0x13f   : > { %v775_v19 = vpop.permute.xlu1 %774 }
 0x140   : > { %v857_v23 = vmul.f32 %v3570_v54, %v775_v19 }
 0x142   : > { %v889_v58 = vadd.f32 %v857_v23, %v693_v22  ;;  %v2963_v23 = vcombine.high %v1299_v39, %v1300_v32 }
 0x143   : > { %v783_v33 = vpop.permute.xlu1 %782 }
 0x144   : > { %v859_v35 = vmul.f32 %v3570_v54, %v783_v33  ;;  %v928_v36 = vadd.f32 %v3591_v10, %v889_v58  ;;  %v1301_v33 = vld [vmem:[%s4302_s5 + $0x180] sm:$0xff] }
 0x146   : > { %v891_v62 = vadd.f32 %v859_v35, %v695_v2  ;;  %v960_v47 = vmax.f32 %v928_v36, 0.0  ;;  %v1302_v2 = vld [vmem:[%s4302_s5 + $0x1a0] sm:$0xff]  ;;  %v864_v35 = vmul.f32 %v3570_v54, %v803_v59 }
 0x147   : > { %v787_v48 = vpop.permute.xlu1 %786  ;;  %v2964_v59 = vcombine.low %v1301_v33, %v1302_v2 }
 0x148   : > { %v860_v41 = vmul.f32 %v3570_v54, %v787_v48  ;;  %v984_v49 = vpack.c.bf16 %v961_v24, %v960_v47  ;;  %v930_v20 = vadd.f32 %v3591_v10, %v891_v62  ;;  %v2962_v62 = vcombine.low %v1299_v39, %v1300_v32 }
 0x149   : > { %v2965_v47 = vcombine.high %v1301_v33, %v1302_v2  ;;  %v866_v39 = vmul.f32 %v3570_v54, %v3815_v30 }
 0x14a   : > { %v892_v53 = vadd.f32 %v860_v41, %v696_v52  ;;  %3066 = vmatprep.mubr.msk.bf16.mxu1 %vm1031_vm0, %v984_v49  ;;  %v962_v37 = vmax.f32 %v930_v20, 0.0  ;;  %v1303_v41 = vld [vmem:[%s4302_s5 + $0x1c0] sm:$0xff]  ;;  %v667_v49 = vmul.f32 %v3565_v51, %v3703_v0 }
 0x14b   : > { %v2967_v63 = vcombine.high %v1303_v41, %v1304_v25 }
 0x14c   : > { %v931_v26 = vadd.f32 %v3591_v10, %v892_v53  ;;  %v425_v61 = vpop.permute.xlu1 %424 }
 0x14d   : > { %v502_v58 = vmul.f32 %v3572_v55, %v425_v61 }
 0x14e   : > { %v963_v1 = vmax.f32 %v931_v26, 0.0 }
 0x14f   : > { %v698_v24 = vadd.f32 %v666_v34, %v502_v58 }
 0x150   : > { %v985_v4 = vpack.c.bf16 %v963_v1, %v962_v37 }
 0x151   : > { %v595_v7 = vpop.permute.xlu1 %594 }
 0x152   : > { %3067 = vmatmul.mubr.msk.bf16.vlgmr.msra.gmra.mrb[0].mxu1 %vm1031_vm0, %v985_v4  ;;  %v665_v44 = vmul.f32 %v3565_v51, %v595_v7 }
 0x153   : > { %1386 = vmatpush1.bf16.msra.mxu1 %v2952_v28  ;;  %v2966_v28 = vcombine.low %v1303_v41, %v1304_v25 }
 0x154   : > { %1387 = vmatprep.subr.bf16.mxu1 %v2955_v6  ;;  %v697_v19 = vadd.f32 %v665_v44, %v501_v16 }
 0x156   : > { %v430_v12 = vpop.permute.xlu1 %429  ;;  %v893_v36 = vadd.f32 %v861_v18, %v697_v19 }
 0x157   : > { %1388 = vmatpush1.bf16.msra.mxu1 %v2954_v11  ;;  %v503_v48 = vmul.f32 %v3572_v55, %v430_v12  ;;  %v445_v12 = vpop.permute.xlu0 %444 }
 0x158   : > { %1389 = vmatprep.subr.bf16.mxu1 %v2957_v56  ;;  %v932_v20 = vadd.f32 %v3591_v10, %v893_v36 }
 0x159   : > { %v699_v31 = vadd.f32 %v667_v49, %v503_v48 }
 0x15a   : > { %v435_v15 = vpop.permute.xlu1 %434  ;;  %v964_v4 = vmax.f32 %v932_v20, 0.0 }
 0x15b   : > { %1390 = vmatpush1.bf16.msra.mxu1 %v2956_v57  ;;  %v504_v27 = vmul.f32 %v3572_v55, %v435_v15  ;;  %v450_v13 = vpop.permute.xlu0 %449  ;;  %v506_v15 = vmul.f32 %v3572_v55, %v445_v12 }
 0x15c   : > { %1391 = vmatprep.subr.bf16.mxu1 %v2959_v3 }
 0x15f   : > { %v607_v43 = vpop.permute.xlu1 %606  ;;  %1392 = vmatpush1.bf16.msra.mxu1 %v2958_v5  ;;  %v460_v14 = vpop.permute.xlu0 %459 }
 0x160   : > { %v668_v22 = vmul.f32 %v3565_v51, %v607_v43  ;;  %1393 = vmatprep.subr.bf16.mxu1 %v2961_v17  ;;  %v507_v43 = vmul.f32 %v3572_v55, %v450_v13  ;;  %v509_v12 = vmul.f32 %v3572_v55, %v460_v14 }
 0x162   : > { %v700_v40 = vadd.f32 %v668_v22, %v504_v27 }
 0x163   : > { %1394 = vmatpush1.bf16.msra.mxu1 %v2960_v21  ;;  %v619_v17 = vpop.permute.xlu0 %618 }
 0x164   : > { %v795_v29 = vpop.permute.xlu1 %794  ;;  %1395 = vmatprep.subr.bf16.mxu1 %v2963_v23  ;;  %v896_v53 = vadd.f32 %v864_v35, %v700_v40  ;;  %v671_v21 = vmul.f32 %v3565_v51, %v619_v17 }
 0x165   : > { %v862_v52 = vmul.f32 %v3570_v54, %v795_v29 }
 0x166   : > { %v935_v6 = vadd.f32 %v3591_v10, %v896_v53  ;;  %v703_v2 = vadd.f32 %v671_v21, %v507_v43 }
 0x167   : > { %v894_v26 = vadd.f32 %v862_v52, %v698_v24  ;;  %1396 = vmatpush1.bf16.msra.mxu1 %v2962_v62 }
 0x168   : > { %v799_v61 = vpop.permute.xlu1 %798  ;;  %1397 = vmatprep.subr.bf16.mxu1 %v2965_v47  ;;  %v967_v56 = vmax.f32 %v935_v6, 0.0 }
 0x169   : > { %v933_v37 = vadd.f32 %v3591_v10, %v894_v26  ;;  %v863_v1 = vmul.f32 %v3570_v54, %v799_v61  ;;  %v631_v61 = vpop.permute.xlu0 %630 }
 0x16a   : > { %v674_v14 = vmul.f32 %v3565_v51, %v631_v61 }
 0x16b   : > { %v965_v7 = vmax.f32 %v933_v37, 0.0  ;;  %v895_v0 = vadd.f32 %v863_v1, %v699_v31  ;;  %1398 = vmatpush1.bf16.msra.mxu1 %v2964_v59 }
 0x16c   : > { %1399 = vmatprep.subr.bf16.mxu1 %v2967_v63 }
 0x16d   : > { %v986_v50 = vpack.c.bf16 %v965_v7, %v964_v4  ;;  %v934_v9 = vadd.f32 %v3591_v10, %v895_v0  ;;  %v440_v11 = vpop.permute.xlu1 %439  ;;  %v635_v37 = vpop.permute.xlu0 %634 }
 0x16e   : > { %v505_v18 = vmul.f32 %v3572_v55, %v440_v11 }
 0x16f   : > { %v966_v45 = vmax.f32 %v934_v9, 0.0  ;;  %3070 = vmatprep.mubr.msk.bf16.mxu1 %vm1031_vm0, %v986_v50  ;;  %1400 = vmatpush1.bf16.msra.mxu1 %v2966_v28  ;;  %v3890_v28 = vld [vmem:[%s4301_s4] ss:$0 sm:$0xff] }
 0x171   : > { %v987_v46 = vpack.c.bf16 %v967_v56, %v966_v45  ;;  %v823_v56 = vpop.permute.xlu0 %822 }
 0x172   : > { %v611_v57 = vpop.permute.xlu1 %610 }
 0x173   : > { %3071 = vmatmul.mubr.msk.bf16.gmra.mrb[4].mxu1 %vm1031_vm0, %v987_v46  ;;  %v669_v32 = vmul.f32 %v3565_v51, %v611_v57 }
 0x175   : > { %v701_v23 = vadd.f32 %v669_v32, %v505_v18 }
 0x176   : > { %v615_v3 = vpop.permute.xlu1 %614 }
 0x177   : > { %v670_v16 = vmul.f32 %v3565_v51, %v615_v3 }
 0x179   : > { %v702_v44 = vadd.f32 %v670_v16, %v506_v15  ;;  %v869_v15 = vmul.f32 %v3570_v54, %v823_v56 }
 0x17b   : > { %v455_v60 = vpop.permute.xlu1 %454  ;;  %v898_v19 = vadd.f32 %v866_v39, %v702_v44  ;;  %v835_v39 = vpop.permute.xlu0 %834 }
 0x17c   : > { %v508_v62 = vmul.f32 %v3572_v55, %v455_v60 }
 0x17d   : > { %v937_v27 = vadd.f32 %v3591_v10, %v898_v19 }
 0x17f   : > { %v969_v40 = vmax.f32 %v937_v27, 0.0  ;;  %v3917_v27 = vld [vmem:[%s4302_s5 + $0x30] sm:$0xff] }
 0x180   : > { %v623_v5 = vpop.permute.xlu1 %622 }
 0x181   : > { %v672_v30 = vmul.f32 %v3565_v51, %v623_v5 }
 0x183   : > { %v704_v48 = vadd.f32 %v672_v30, %v508_v62  ;;  %v675_v62 = vmul.f32 %v3565_v51, %v635_v37 }
 0x185   : > { %v807_v22 = vpop.permute.xlu1 %806 }
 0x186   : > { %v865_v58 = vmul.f32 %v3570_v54, %v807_v22 }
 0x188   : > { %v897_v33 = vadd.f32 %v865_v58, %v701_v23  ;;  %v872_v23 = vmul.f32 %v3570_v54, %v835_v39  ;;  %v3912_v58 = vld [vmem:[%s4302_s5 + $0x10] sm:$0xff] }
 0x189   : > { %v815_v34 = vpop.permute.xlu1 %814  ;;  %v2984_v56 = vcombine.low %v3912_v58, %v3917_v27 }
 0x18a   : > { %v936_v35 = vadd.f32 %v3591_v10, %v897_v33  ;;  %v867_v36 = vmul.f32 %v3570_v54, %v815_v34  ;;  %v2445_v33 = vld [vmem:[%s4302_s5 + $0x18] sm:$0xff] }
 0x18b   : > { %v2446_v34 = vld [vmem:[%s4302_s5 + $0x38] sm:$0xff] }
 0x18c   : > { %v968_v29 = vmax.f32 %v936_v35, 0.0  ;;  %v899_v47 = vadd.f32 %v867_v36, %v703_v2  ;;  %v2985_v2 = vcombine.high %v3912_v58, %v3917_v27  ;;  %v3000_v35 = vcombine.low %v2445_v33, %v2446_v34  ;;  %v2067_v27 = vld [vmem:[%s4302_s5 + $0xd0] sm:$0xff] }
 0x18d   : > { %v819_v24 = vpop.permute.xlu1 %818  ;;  %v3001_v36 = vcombine.high %v2445_v33, %v2446_v34  ;;  %v2068_v33 = vld [vmem:[%s4302_s5 + $0xf0] sm:$0xff] }
 0x18e   : > { %v988_v52 = vpack.c.bf16 %v969_v40, %v968_v29  ;;  %v868_v41 = vmul.f32 %v3570_v54, %v819_v24  ;;  %v938_v25 = vadd.f32 %v3591_v10, %v899_v47  ;;  %2157 = vmatprep.subr.bf16.mxu1 %v2985_v2  ;;  %v2451_v2 = vld [vmem:[%s4302_s5 + $0xd8] sm:$0xff]  ;;  %v2990_v34 = vcombine.low %v2067_v27, %v2068_v33 }
 0x18f   : > { %2541 = vmatprep.subr.bf16.mxu0 %v3001_v36 }
 0x190   : > { %v900_v49 = vadd.f32 %v868_v41, %v704_v48  ;;  %3074 = vmatprep.mubr.msk.bf16.mxu1 %vm1031_vm0, %v988_v52  ;;  %v970_v26 = vmax.f32 %v938_v25, 0.0 }
 0x192   : > { %v939_v20 = vadd.f32 %v3591_v10, %v900_v49  ;;  %v465_v53 = vpop.permute.xlu1 %464 }
 0x193   : > { %v510_v43 = vmul.f32 %v3572_v55, %v465_v53 }
 0x194   : > { %v971_v59 = vmax.f32 %v939_v20, 0.0 }
 0x195   : > { %v706_v40 = vadd.f32 %v674_v14, %v510_v43 }
 0x196   : > { %v989_v63 = vpack.c.bf16 %v971_v59, %v970_v26  ;;  %v2448_v26 = vld [vmem:[%s4302_s5 + $0x78] sm:$0xff] }
 0x197   : > { %v627_v31 = vpop.permute.xlu1 %626 }
 0x198   : > { %3075 = vmatmul.mubr.msk.bf16.gmra.mrb[8].mxu1 %vm1031_vm0, %v989_v63  ;;  %v673_v0 = vmul.f32 %v3565_v51, %v627_v31 }
 0x19a   : > { %v705_v60 = vadd.f32 %v673_v0, %v509_v12  ;;  %v2450_v0 = vld [vmem:[%s4302_s5 + $0xb8] sm:$0xff] }
 0x19c   : > { %v470_v1 = vpop.permute.xlu1 %469  ;;  %v901_v21 = vadd.f32 %v869_v15, %v705_v60 }
 0x19d   : > { %v511_v29 = vmul.f32 %v3572_v55, %v470_v1 }
 0x19e   : > { %v3052_v4 = vpop.f32.mrb[0].mxu0  ;;  %v940_v24 = vadd.f32 %v3591_v10, %v901_v21 }
 0x19f   : > { %v1123_v6 = vadd.f32 %v3052_v4, %v3890_v28  ;;  %v1114_v7 = vpop.f32.mrb[1].mxu0  ;;  %v707_v25 = vadd.f32 %v675_v62, %v511_v29  ;;  %v2069_v62 = vld [vmem:[%s4302_s5 + $0x110] sm:$0xff] }
 0x1a0   : > { %v1115_v50 = vadd.f32 %v3890_v28, %v1114_v7  ;;  %v3053_v9 = vpop.f32.mrb[2].mxu0  ;;  %v475_v11 = vpop.permute.xlu1 %474  ;;  %v2449_v7 = vld [vmem:[%s4302_s5 + $0x98] sm:$0xff]  ;;  %v2070_v29 = vld [vmem:[%s4302_s5 + $0x130] sm:$0xff] }
 0x1a1   : > { %v1126_v45 = vadd.f32 %v3053_v9, %v3890_v28  ;;  %v1117_v46 = vpop.f32.mrb[3].mxu0  ;;  %v1243_v13 = vmax.f32 %v1123_v6, 0.0  ;;  %v512_v32 = vmul.f32 %v3572_v55, %v475_v11  ;;  %v972_v55 = vmax.f32 %v940_v24, 0.0  ;;  %v2064_v11 = vld [vmem:[%s4302_s5 + $0x70] sm:$0xff] }
 0x1a2   : > { %v1118_v57 = vadd.f32 %v3890_v28, %v1117_v46  ;;  %v1241_v16 = vmax.f32 %v1115_v50, 0.0  ;;  %v3004_v50 = vcombine.low %v2449_v7, %v2450_v0  ;;  %v3005_v9 = vcombine.high %v2449_v7, %v2450_v0  ;;  %v2072_v7 = vld [vmem:[%s4302_s5 + $0x170] sm:$0xff]  ;;  %v2455_v0 = vld [vmem:[%s4302_s5 + $0x158] sm:$0xff] }
 0x1a3   : > { %v1244_v3 = vmax.f32 %v1126_v45, 0.0  ;;  %v2992_v24 = vcombine.low %v2069_v62, %v2070_v29 }
 0x1a4   : > { %v1242_v44 = vmax.f32 %v1118_v57, 0.0 }
 0x1a5   : > { %v3899_v5 = vpack.c.bf16 %v1244_v3, %v1243_v13  ;;  %v639_v17 = vpop.permute.xlu1 %638  ;;  %v2065_v13 = vld [vmem:[%s4302_s5 + $0x90] sm:$0xff] }
 0x1a6   : > { %v3902_v18 = vpack.c.bf16 %v1242_v44, %v1241_v16  ;;  %v676_v19 = vmul.f32 %v3565_v51, %v639_v17  ;;  %v2447_v51 = vld [vmem:[%s4302_s5 + $0x58] sm:$0xff]  ;;  %v2066_v3 = vld [vmem:[%s4302_s5 + $0xb0] sm:$0xff] }
 0x1a7   : > { %v3002_v63 = vcombine.low %v2447_v51, %v2448_v26  ;;  %v3003_v31 = vcombine.high %v2447_v51, %v2448_v26  ;;  %v2988_v58 = vcombine.low %v2065_v13, %v2066_v3 }
 0x1a8   : > { %v708_v22 = vadd.f32 %v676_v19, %v512_v32  ;;  %1806 = vmatmul.mubr.bf16.vlgmr.msra.gmra.mrb[16].mxu0 %v3902_v18  ;;  %v2989_v32 = vcombine.high %v2065_v13, %v2066_v3 }
 0x1a9   : > { %1815 = vmatprep.mubr.bf16.mxu0 %v3316_v8  ;;  %2542 = vmatpush1.bf16.msra.mxu0 %v3000_v35  ;;  %v2452_v35 = vld [vmem:[%s4302_s5 + $0xf8] sm:$0xff] }
 0x1aa   : > { %v827_v30 = vpop.permute.xlu1 %826  ;;  %v904_v48 = vadd.f32 %v872_v23, %v708_v22  ;;  %2543 = vmatprep.subr.bf16.mxu0 %v3003_v31  ;;  %v3006_v36 = vcombine.low %v2451_v2, %v2452_v35 }
 0x1ab   : > { %v870_v47 = vmul.f32 %v3570_v54, %v827_v30  ;;  %v2991_v30 = vcombine.high %v2067_v27, %v2068_v33 }
 0x1ac   : > { %v943_v53 = vadd.f32 %v3591_v10, %v904_v48  ;;  %v2993_v48 = vcombine.high %v2069_v62, %v2070_v29  ;;  %v2460_v29 = vld [vmem:[%s4302_s5 + $0x1f8] sm:$0xff] }
 0x1ad   : > { %v902_v52 = vadd.f32 %v870_v47, %v706_v40  ;;  %2544 = vmatpush1.bf16.msra.mxu0 %v3002_v63  ;;  %v3007_v40 = vcombine.high %v2451_v2, %v2452_v35  ;;  %v2453_v47 = vld [vmem:[%s4302_s5 + $0x118] sm:$0xff]  ;;  %v2076_v35 = vld [vmem:[%s4302_s5 + $0x1f0] sm:$0xff] }
 0x1ae   : > { %v831_v41 = vpop.permute.xlu1 %830  ;;  %v975_v1 = vmax.f32 %v943_v53, 0.0  ;;  %2545 = vmatprep.subr.bf16.mxu0 %v3005_v9 }
 0x1af   : > { %v941_v49 = vadd.f32 %v3591_v10, %v902_v52  ;;  %v871_v20 = vmul.f32 %v3570_v54, %v831_v41  ;;  %v2454_v52 = vld [vmem:[%s4302_s5 + $0x138] sm:$0xff] }
 0x1b0   : > { %1816 = vmatmul.mubr.bf16.gmra.mrb[20].mxu0 %v3899_v5  ;;  %v3008_v41 = vcombine.low %v2453_v47, %v2454_v52 }
 0x1b1   : > { %v973_v59 = vmax.f32 %v941_v49, 0.0  ;;  %v903_v61 = vadd.f32 %v871_v20, %v707_v25  ;;  %1825 = vmatprep.mubr.bf16.mxu0 %v3316_v8  ;;  %2546 = vmatpush1.bf16.msra.mxu0 %v3004_v50  ;;  %v3009_v25 = vcombine.high %v2453_v47, %v2454_v52 }
 0x1b2   : > { %2547 = vmatprep.subr.bf16.mxu0 %v3007_v40 }
 0x1b3   : > { %v990_v54 = vpack.c.bf16 %v973_v59, %v972_v55  ;;  %v942_v37 = vadd.f32 %v3591_v10, %v903_v61  ;;  %v2063_v10 = vld [vmem:[%s4302_s5 + $0x50] sm:$0xff] }
 0x1b4   : > { %v2987_v46 = vcombine.high %v2063_v10, %v2064_v11  ;;  %v2986_v17 = vcombine.low %v2063_v10, %v2064_v11  ;;  %v2456_v10 = vld [vmem:[%s4302_s5 + $0x178] sm:$0xff] }
 0x1b5   : > { %v974_v4 = vmax.f32 %v942_v37, 0.0  ;;  %3078 = vmatprep.mubr.msk.bf16.mxu1 %vm1031_vm0, %v990_v54  ;;  %2548 = vmatpush1.bf16.msra.mxu0 %v3006_v36  ;;  %v3010_v11 = vcombine.low %v2455_v0, %v2456_v10  ;;  %v2459_v36 = vld [vmem:[%s4302_s5 + $0x1d8] sm:$0xff] }
 0x1b6   : > { %2549 = vmatprep.subr.bf16.mxu0 %v3009_v25  ;;  %v3014_v47 = vcombine.low %v2459_v36, %v2460_v29 }
 0x1b7   : > { %v991_v6 = vpack.c.bf16 %v975_v1, %v974_v4 }
 0x1b9   : > { %3079 = vmatmul.mubr.msk.bf16.gmra.mrb[12].mxu1 %vm1031_vm0, %v991_v6  ;;  %2550 = vmatpush1.bf16.msra.mxu0 %v3008_v41  ;;  %v2071_v6 = vld [vmem:[%s4302_s5 + $0x150] sm:$0xff] }
 0x1ba   : > { %1417 = vmatprep.mubr.bf16.mxu1 %v3316_v8  ;;  %v2994_v50 = vcombine.low %v2071_v6, %v2072_v7  ;;  %v2995_v9 = vcombine.high %v2071_v6, %v2072_v7 }
 0x1bf   : > { %v3056_v45 = vpop.f32.mrb[4].mxu0 }
 0x1c0   : > { %v1139_v12 = vadd.f32 %v3056_v45, %v3890_v28  ;;  %v1130_v57 = vpop.f32.mrb[5].mxu0 }
 0x1c1   : > { %v1131_v60 = vadd.f32 %v3890_v28, %v1130_v57  ;;  %v3057_v15 = vpop.f32.mrb[6].mxu0  ;;  %1418 = vmatmul.mubr.bf16.vlgmr.msra.gmra.mrb[16].mxu1 %v3902_v18 }
 0x1c2   : > { %v1142_v16 = vadd.f32 %v3057_v15, %v3890_v28  ;;  %v1133_v44 = vpop.f32.mrb[7].mxu0  ;;  %1427 = vmatprep.mubr.bf16.mxu1 %v3316_v8  ;;  %2158 = vmatpush1.bf16.msra.mxu1 %v2984_v56  ;;  %v1247_v19 = vmax.f32 %v1139_v12, 0.0  ;;  %v3011_v56 = vcombine.high %v2455_v0, %v2456_v10 }
 0x1c3   : > { %v1134_v39 = vadd.f32 %v3890_v28, %v1133_v44  ;;  %2159 = vmatprep.subr.bf16.mxu1 %v2987_v46  ;;  %v1245_v43 = vmax.f32 %v1131_v60, 0.0 }
 0x1c4   : > { %v1248_v14 = vmax.f32 %v1142_v16, 0.0  ;;  %2551 = vmatprep.subr.bf16.mxu0 %v3011_v56 }
 0x1c5   : > { %v1246_v21 = vmax.f32 %v1134_v39, 0.0  ;;  %2552 = vmatpush1.bf16.msra.mxu0 %v3010_v11 }
 0x1c6   : > { %v3973_v22 = vpack.c.bf16 %v1248_v14, %v1247_v19  ;;  %2160 = vmatpush1.bf16.msra.mxu1 %v2986_v17  ;;  %v2074_v19 = vld [vmem:[%s4302_s5 + $0x1b0] sm:$0xff]  ;;  %v2457_v14 = vld [vmem:[%s4302_s5 + $0x198] sm:$0xff] }
 0x1c7   : > { %v3975_v23 = vpack.c.bf16 %v1246_v21, %v1245_v43  ;;  %2161 = vmatprep.subr.bf16.mxu1 %v2989_v32  ;;  %v2073_v32 = vld [vmem:[%s4302_s5 + $0x190] sm:$0xff] }
 0x1c8   : > { %v2997_v21 = vcombine.high %v2073_v32, %v2074_v19  ;;  %v2996_v33 = vcombine.low %v2073_v32, %v2074_v19 }
 0x1c9   : > { %1428 = vmatmul.mubr.bf16.gmra.mrb[20].mxu1 %v3899_v5  ;;  %1826 = vmatmul.mubr.bf16.gmra.mrb[24].mxu0 %v3975_v23 }
 0x1ca   : > { %1437 = vmatprep.mubr.bf16.mxu1 %v3316_v8  ;;  %1835 = vmatprep.mubr.bf16.mxu0 %v3316_v8 }
 0x1cb   : > { %2162 = vmatpush1.bf16.msra.mxu1 %v2988_v58  ;;  %v2458_v58 = vld [vmem:[%s4302_s5 + $0x1b8] sm:$0xff] }
 0x1cc   : > { %2163 = vmatprep.subr.bf16.mxu1 %v2991_v30  ;;  %v3013_v2 = vcombine.high %v2457_v14, %v2458_v58  ;;  %v2075_v30 = vld [vmem:[%s4302_s5 + $0x1d0] sm:$0xff] }
 0x1cd   : > { %v2998_v40 = vcombine.low %v2075_v30, %v2076_v35  ;;  %v2999_v62 = vcombine.high %v2075_v30, %v2076_v35 }
 0x1ce   : > { %2553 = vmatprep.subr.bf16.mxu0 %v3013_v2 }
 0x1cf   : > { %2164 = vmatpush1.bf16.msra.mxu1 %v2990_v34  ;;  %v3012_v34 = vcombine.low %v2457_v14, %v2458_v58 }
 0x1d0   : > { %2165 = vmatprep.subr.bf16.mxu1 %v2993_v48 }
 0x1d1   : > { %1438 = vmatmul.mubr.bf16.gmra.mrb[24].mxu1 %v3975_v23  ;;  %1836 = vmatmul.mubr.bf16.gmra.mrb[28].mxu0 %v3973_v22 }
 0x1d2   : > { %1447 = vmatprep.mubr.bf16.mxu1 %v3316_v8  ;;  %1845 = vmatprep.mubr.bf16.mxu0 %v3316_v8 }
 0x1d3   : > { %2166 = vmatpush1.bf16.msra.mxu1 %v2992_v24  ;;  %2554 = vmatpush1.bf16.msra.mxu0 %v3012_v34  ;;  %v3015_v24 = vcombine.high %v2459_v36, %v2460_v29 }
 0x1d4   : > { %2167 = vmatprep.subr.bf16.mxu1 %v2995_v9 }
 0x1d5   : > { %2555 = vmatprep.subr.bf16.mxu0 %v3015_v24 }
 0x1d7   : > { %2168 = vmatpush1.bf16.msra.mxu1 %v2994_v50  ;;  %2556 = vmatpush1.bf16.msra.mxu0 %v3014_v47 }
 0x1d8   : > { %2169 = vmatprep.subr.bf16.mxu1 %v2997_v21 }
 0x1d9   : > { %1448 = vmatmul.mubr.bf16.gmra.mrb[28].mxu1 %v3973_v22 }
 0x1da   : > { %1457 = vmatprep.mubr.bf16.mxu1 %v3316_v8 }
 0x1db   : > { %2170 = vmatpush1.bf16.msra.mxu1 %v2996_v33 }
 0x1dc   : > { %2171 = vmatprep.subr.bf16.mxu1 %v2999_v62 }
 0x1df   : > { %v3060_v49 = vpop.f32.mrb[8].mxu0  ;;  %2172 = vmatpush1.bf16.msra.mxu1 %v2998_v40 }
 0x1e0   : > { %v1155_v20 = vadd.f32 %v3060_v49, %v3890_v28  ;;  %v1146_v51 = vpop.f32.mrb[9].mxu0 }
 0x1e1   : > { %v1147_v55 = vadd.f32 %v3890_v28, %v1146_v51  ;;  %v3061_v53 = vpop.f32.mrb[10].mxu0 }
 0x1e2   : > { %v1158_v26 = vadd.f32 %v3061_v53, %v3890_v28  ;;  %v1149_v59 = vpop.f32.mrb[11].mxu0  ;;  %v1251_v63 = vmax.f32 %v1155_v20, 0.0 }
 0x1e3   : > { %v1150_v61 = vadd.f32 %v3890_v28, %v1149_v59  ;;  %v1249_v54 = vmax.f32 %v1147_v55, 0.0 }
 0x1e4   : > { %v1252_v31 = vmax.f32 %v1158_v26, 0.0 }
 0x1e5   : > { %v1250_v37 = vmax.f32 %v1150_v61, 0.0 }
 0x1e6   : > { %v4015_v1 = vpack.c.bf16 %v1252_v31, %v1251_v63 }
 0x1e7   : > { %v4017_v4 = vpack.c.bf16 %v1250_v37, %v1249_v54 }
 0x1e9   : > { %1458 = vmatmul.mubr.bf16.gmra.mrb[32].mxu1 %v4017_v4  ;;  %1846 = vmatmul.mubr.bf16.gmra.mrb[32].mxu0 %v4017_v4 }
 0x1ea   : > { %1467 = vmatprep.mubr.bf16.mxu1 %v3316_v8  ;;  %1855 = vmatprep.mubr.bf16.mxu0 %v3316_v8 }
 0x1f1   : > { %1468 = vmatmul.mubr.bf16.gmra.mrb[36].mxu1 %v4015_v1  ;;  %1856 = vmatmul.mubr.bf16.gmra.mrb[36].mxu0 %v4015_v1 }
 0x1f2   : > { %1477 = vmatprep.mubr.bf16.mxu1 %v3316_v8  ;;  %1865 = vmatprep.mubr.bf16.mxu0 %v3316_v8 }
 0x200   : > { %v3064_v45 = vpop.f32.mrb[12].mxu0 }
 0x201   : > { %v1171_v46 = vadd.f32 %v3064_v45, %v3890_v28  ;;  %v1162_v12 = vpop.f32.mrb[13].mxu0 }
 0x202   : > { %v1163_v57 = vadd.f32 %v3890_v28, %v1162_v12  ;;  %v3065_v13 = vpop.f32.mrb[14].mxu0 }
 0x203   : > { %v1174_v3 = vadd.f32 %v3065_v13, %v3890_v28  ;;  %v1165_v60 = vpop.f32.mrb[15].mxu0  ;;  %v1255_v16 = vmax.f32 %v1171_v46, 0.0 }
 0x204   : > { %v1166_v15 = vadd.f32 %v3890_v28, %v1165_v60  ;;  %v1253_v17 = vmax.f32 %v1163_v57, 0.0 }
 0x205   : > { %v1256_v44 = vmax.f32 %v1174_v3, 0.0 }
 0x206   : > { %v1254_v39 = vmax.f32 %v1166_v15, 0.0 }
 0x207   : > { %v4052_v43 = vpack.c.bf16 %v1256_v44, %v1255_v16 }
 0x208   : > { %v4057_v27 = vpack.c.bf16 %v1254_v39, %v1253_v17 }
 0x20a   : > { %1478 = vmatmul.mubr.bf16.gmra.mrb[40].mxu1 %v4057_v27  ;;  %1866 = vmatmul.mubr.bf16.gmra.mrb[40].mxu0 %v4057_v27 }
 0x20b   : > { %1487 = vmatprep.mubr.bf16.mxu1 %v3316_v8  ;;  %1875 = vmatprep.mubr.bf16.mxu0 %v3316_v8 }
 0x212   : > { %1488 = vmatmul.mubr.bf16.gmra.mrb[44].mxu1 %v4052_v43  ;;  %1876 = vmatmul.mubr.bf16.gmra.mrb[44].mxu0 %v4052_v43 }
 0x213   : > { %1497 = vmatprep.mubr.bf16.mxu1 %v3316_v8  ;;  %1885 = vmatprep.mubr.bf16.mxu0 %v3316_v8 }
 0x225   : > { %v3068_v48 = vpop.f32.mrb[0].mxu1 }
 0x226   : > { %v1187_v52 = vadd.f32 %v3068_v48, %v3890_v28  ;;  %v1178_v41 = vpop.f32.mrb[1].mxu1 }
 0x227   : > { %v1179_v25 = vadd.f32 %v3890_v28, %v1178_v41  ;;  %v3069_v49 = vpop.f32.mrb[2].mxu1 }
 0x228   : > { %v1190_v20 = vadd.f32 %v3069_v49, %v3890_v28  ;;  %v1181_v51 = vpop.f32.mrb[3].mxu1  ;;  %v1259_v53 = vmax.f32 %v1187_v52, 0.0 }
 0x229   : > { %v1182_v55 = vadd.f32 %v3890_v28, %v1181_v51  ;;  %v1257_v59 = vmax.f32 %v1179_v25, 0.0 }
 0x22a   : > { %v1260_v26 = vmax.f32 %v1190_v20, 0.0 }
 0x22b   : > { %v1258_v61 = vmax.f32 %v1182_v55, 0.0 }
 0x22c   : > { %v4083_v63 = vpack.c.bf16 %v1260_v26, %v1259_v53 }
 0x22d   : > { %v4085_v31 = vpack.c.bf16 %v1258_v61, %v1257_v59 }
 0x22f   : > { %1498 = vmatmul.mubr.bf16.gmra.mrb[48].mxu1 %v4085_v31  ;;  %1886 = vmatmul.mubr.bf16.gmra.mrb[48].mxu0 %v4085_v31 }
 0x230   : > { %1507 = vmatprep.mubr.bf16.mxu1 %v3316_v8  ;;  %1895 = vmatprep.mubr.bf16.mxu0 %v3316_v8 }
 0x237   : > { %1508 = vmatmul.mubr.bf16.gmra.mrb[52].mxu1 %v4083_v63  ;;  %1896 = vmatmul.mubr.bf16.gmra.mrb[52].mxu0 %v4083_v63 }
 0x238   : > { %1517 = vmatprep.mubr.bf16.mxu1 %v3316_v8  ;;  %1905 = vmatprep.mubr.bf16.mxu0 %v3316_v8 }
 0x246   : > { %v3072_v54 = vpop.f32.mrb[4].mxu1 }
 0x247   : > { %v1203_v37 = vadd.f32 %v3072_v54, %v3890_v28  ;;  %v1194_v6 = vpop.f32.mrb[5].mxu1 }
 0x248   : > { %v1195_v7 = vadd.f32 %v3890_v28, %v1194_v6  ;;  %v3073_v0 = vpop.f32.mrb[6].mxu1 }
 0x249   : > { %v1206_v50 = vadd.f32 %v3073_v0, %v3890_v28  ;;  %v1197_v9 = vpop.f32.mrb[7].mxu1  ;;  %v1263_v11 = vmax.f32 %v1203_v37, 0.0 }
 0x24a   : > { %v1198_v10 = vadd.f32 %v3890_v28, %v1197_v9  ;;  %v1261_v45 = vmax.f32 %v1195_v7, 0.0 }
 0x24b   : > { %v1264_v56 = vmax.f32 %v1206_v50, 0.0 }
 0x24c   : > { %v1262_v46 = vmax.f32 %v1198_v10, 0.0 }
 0x24d   : > { %v4099_v12 = vpack.c.bf16 %v1264_v56, %v1263_v11 }
 0x24e   : > { %v4101_v57 = vpack.c.bf16 %v1262_v46, %v1261_v45 }
 0x250   : > { %1518 = vmatmul.mubr.bf16.gmra.mrb[56].mxu1 %v4101_v57  ;;  %1906 = vmatmul.mubr.bf16.gmra.mrb[56].mxu0 %v4101_v57 }
 0x251   : > { %1527 = vmatprep.mubr.bf16.mxu1 %v3316_v8  ;;  %1915 = vmatprep.mubr.bf16.mxu0 %v3316_v8 }
 0x258   : > { %1528 = vmatmul.mubr.bf16.gmra.mrb[60].mxu1 %v4099_v12  ;;  %1916 = vmatmul.mubr.bf16.gmra.mrb[60].mxu0 %v4099_v12 }
 0x259   : > { %1537 = vmatprep.mubr.bf16.mxu1 %v3316_v8  ;;  %1925 = vmatprep.mubr.bf16.mxu0 %v3316_v8 }
 0x26b   : > { %v3076_v13 = vpop.f32.mrb[8].mxu1 }
 0x26c   : > { %v1219_v3 = vadd.f32 %v3076_v13, %v3890_v28  ;;  %v1210_v60 = vpop.f32.mrb[9].mxu1 }
 0x26d   : > { %v1211_v15 = vadd.f32 %v3890_v28, %v1210_v60  ;;  %v3077_v16 = vpop.f32.mrb[10].mxu1 }
 0x26e   : > { %v1222_v44 = vadd.f32 %v3077_v16, %v3890_v28  ;;  %v1213_v17 = vpop.f32.mrb[11].mxu1  ;;  %v1267_v32 = vmax.f32 %v1219_v3, 0.0 }
 0x26f   : > { %v1214_v39 = vadd.f32 %v3890_v28, %v1213_v17  ;;  %v1265_v14 = vmax.f32 %v1211_v15, 0.0 }
 0x270   : > { %v1268_v19 = vmax.f32 %v1222_v44, 0.0 }
 0x271   : > { %v1266_v21 = vmax.f32 %v1214_v39, 0.0 }
 0x272   : > { %v4115_v58 = vpack.c.bf16 %v1268_v19, %v1267_v32 }
 0x273   : > { %v4117_v33 = vpack.c.bf16 %v1266_v21, %v1265_v14 }
 0x275   : > { %1538 = vmatmul.mubr.bf16.gmra.mrb[64].mxu1 %v4117_v33  ;;  %1926 = vmatmul.mubr.bf16.gmra.mrb[64].mxu0 %v4117_v33 }
 0x276   : > { %1547 = vmatprep.mubr.bf16.mxu1 %v3316_v8  ;;  %1935 = vmatprep.mubr.bf16.mxu0 %v3316_v8 }
 0x27b   : > { %v1807_v2 = vpop.f32.mrb[16].mxu0 }
 0x27c   : > { %v1809_v34 = vpop.f32.mrb[17].mxu0 }
 0x27d   : > { %1548 = vmatmul.mubr.bf16.gmra.mrb[68].mxu1 %v4115_v58  ;;  %v1811_v30 = vpop.f32.mrb[18].mxu0  ;;  %1936 = vmatmul.mubr.bf16.gmra.mrb[68].mxu0 %v4115_v58 }
 0x27e   : > { %v1813_v35 = vpop.f32.mrb[19].mxu0  ;;  %1557 = vmatprep.mubr.bf16.mxu1 %v3316_v8  ;;  %1945 = vmatprep.mubr.bf16.mxu0 %v3316_v8 }
 0x283   : > { %v1817_v36 = vpop.f32.mrb[20].mxu0 }
 0x284   : > { %v1966_v40 = vmax.f32 %v1807_v2, %v1817_v36  ;;  %v1819_v62 = vpop.f32.mrb[21].mxu0 }
 0x285   : > { %v2003_v29 = vmax.f32 %v1809_v34, %v1819_v62  ;;  %v1821_v47 = vpop.f32.mrb[22].mxu0 }
 0x286   : > { %v1967_v24 = vmax.f32 %v1811_v30, %v1821_v47  ;;  %v1823_v48 = vpop.f32.mrb[23].mxu0 }
 0x287   : > { %v2004_v52 = vmax.f32 %v1813_v35, %v1823_v48 }
 0x28c   : > { %v3080_v41 = vpop.f32.mrb[12].mxu1 }
 0x28d   : > { %v1235_v25 = vadd.f32 %v3080_v41, %v3890_v28  ;;  %v1226_v49 = vpop.f32.mrb[13].mxu1 }
 0x28e   : > { %v1227_v20 = vadd.f32 %v3890_v28, %v1226_v49  ;;  %v3081_v51 = vpop.f32.mrb[14].mxu1 }
 0x28f   : > { %v1238_v55 = vadd.f32 %v3081_v51, %v3890_v28  ;;  %v1229_v53 = vpop.f32.mrb[15].mxu1  ;;  %v1271_v59 = vmax.f32 %v1235_v25, 0.0 }
 0x290   : > { %v1230_v26 = vadd.f32 %v3890_v28, %v1229_v53  ;;  %v1269_v54 = vmax.f32 %v1227_v20, 0.0 }
 0x291   : > { %v1272_v61 = vmax.f32 %v1238_v55, 0.0 }
 0x292   : > { %v1270_v37 = vmax.f32 %v1230_v26, 0.0 }
 0x293   : > { %v4131_v6 = vpack.c.bf16 %v1272_v61, %v1271_v59 }
 0x294   : > { %v4133_v7 = vpack.c.bf16 %v1270_v37, %v1269_v54  ;;  %v1419_v0 = vpop.f32.mrb[16].mxu1 }
 0x295   : > { %v1421_v50 = vpop.f32.mrb[17].mxu1 }
 0x296   : > { %v1423_v9 = vpop.f32.mrb[18].mxu1  ;;  %1558 = vmatmul.mubr.bf16.gmra.mrb[72].mxu1 %v4133_v7  ;;  %1946 = vmatmul.mubr.bf16.gmra.mrb[72].mxu0 %v4133_v7 }
 0x297   : > { %v1425_v10 = vpop.f32.mrb[19].mxu1  ;;  %1567 = vmatprep.mubr.bf16.mxu1 %v3316_v8  ;;  %1955 = vmatprep.mubr.bf16.mxu0 %v3316_v8 }
 0x29c   : > { %v1429_v28 = vpop.f32.mrb[20].mxu1  ;;  %v1827_v11 = vpop.f32.mrb[24].mxu0 }
 0x29d   : > { %v1578_v56 = vmax.f32 %v1419_v0, %v1429_v28  ;;  %v1968_v45 = vmax.f32 %v1966_v40, %v1827_v11  ;;  %v1431_v46 = vpop.f32.mrb[21].mxu1  ;;  %v1829_v13 = vpop.f32.mrb[25].mxu0 }
 0x29e   : > { %v1615_v3 = vmax.f32 %v1421_v50, %v1431_v46  ;;  %v2005_v60 = vmax.f32 %v2003_v29, %v1829_v13  ;;  %v1433_v15 = vpop.f32.mrb[22].mxu1  ;;  %1568 = vmatmul.mubr.bf16.gmra.mrb[76].mxu1 %v4131_v6  ;;  %v1831_v16 = vpop.f32.mrb[26].mxu0  ;;  %1956 = vmatmul.mubr.bf16.gmra.mrb[76].mxu0 %v4131_v6 }
 0x29f   : > { %v1579_v44 = vmax.f32 %v1423_v9, %v1433_v15  ;;  %v1969_v17 = vmax.f32 %v1967_v24, %v1831_v16  ;;  %v1435_v39 = vpop.f32.mrb[23].mxu1  ;;  %v1833_v32 = vpop.f32.mrb[27].mxu0  ;;  %2189 = vmatprep.mubr.bf16.mxu1 %v3316_v8  ;;  %2573 = vmatprep.mubr.bf16.mxu0 %v3316_v8 }
 0x2a0   : > { %v1616_v19 = vmax.f32 %v1425_v10, %v1435_v39  ;;  %v2006_v14 = vmax.f32 %v2004_v52, %v1833_v32 }
 0x2a4   : > { %v1439_v21 = vpop.f32.mrb[24].mxu1  ;;  %v1837_v2 = vpop.f32.mrb[28].mxu0 }
 0x2a5   : > { %v1580_v34 = vmax.f32 %v1578_v56, %v1439_v21  ;;  %v1970_v30 = vmax.f32 %v1968_v45, %v1837_v2  ;;  %v1441_v35 = vpop.f32.mrb[25].mxu1  ;;  %v1839_v36 = vpop.f32.mrb[29].mxu0 }
 0x2a6   : > { %v1617_v40 = vmax.f32 %v1615_v3, %v1441_v35  ;;  %v2007_v62 = vmax.f32 %v2005_v60, %v1839_v36  ;;  %v1443_v29 = vpop.f32.mrb[26].mxu1  ;;  %v1841_v47 = vpop.f32.mrb[30].mxu0  ;;  %2190 = vmatmul.mubr.bf16.vlgmr.msra.gmra.mrb[80].mxu1 %v3902_v18  ;;  %2574 = vmatmul.mubr.bf16.vlgmr.msra.gmra.mrb[80].mxu0 %v3902_v18 }
 0x2a7   : > { %v1581_v24 = vmax.f32 %v1579_v44, %v1443_v29  ;;  %v1971_v48 = vmax.f32 %v1969_v17, %v1841_v47  ;;  %v1445_v41 = vpop.f32.mrb[27].mxu1  ;;  %v1843_v25 = vpop.f32.mrb[31].mxu0  ;;  %2199 = vmatprep.mubr.bf16.mxu1 %v3316_v8  ;;  %2583 = vmatprep.mubr.bf16.mxu0 %v3316_v8 }
 0x2a8   : > { %v1618_v52 = vmax.f32 %v1616_v19, %v1445_v41  ;;  %v2008_v49 = vmax.f32 %v2006_v14, %v1843_v25 }
 0x2ac   : > { %v1449_v20 = vpop.f32.mrb[28].mxu1 }
 0x2ad   : > { %v1582_v51 = vmax.f32 %v1580_v34, %v1449_v20  ;;  %v1451_v55 = vpop.f32.mrb[29].mxu1 }
 0x2ae   : > { %v1619_v53 = vmax.f32 %v1617_v40, %v1451_v55  ;;  %v1453_v26 = vpop.f32.mrb[30].mxu1  ;;  %2200 = vmatmul.mubr.bf16.gmra.mrb[84].mxu1 %v3899_v5  ;;  %2584 = vmatmul.mubr.bf16.gmra.mrb[84].mxu0 %v3899_v5 }
 0x2af   : > { %v1583_v18 = vmax.f32 %v1581_v24, %v1453_v26  ;;  %v1455_v59 = vpop.f32.mrb[31].mxu1  ;;  %2209 = vmatprep.mubr.bf16.mxu1 %v3316_v8  ;;  %2593 = vmatprep.mubr.bf16.mxu0 %v3316_v8 }
 0x2b0   : > { %v1620_v61 = vmax.f32 %v1618_v52, %v1455_v59 }
 0x2b6   : > { %2210 = vmatmul.mubr.bf16.gmra.mrb[88].mxu1 %v3975_v23  ;;  %2594 = vmatmul.mubr.bf16.gmra.mrb[88].mxu0 %v3975_v23 }
 0x2b7   : > { %2219 = vmatprep.mubr.bf16.mxu1 %v3316_v8  ;;  %2603 = vmatprep.mubr.bf16.mxu0 %v3316_v8 }
 0x2bc   : > { %v1459_v54 = vpop.f32.mrb[32].mxu1  ;;  %v1847_v37 = vpop.f32.mrb[32].mxu0 }
 0x2bd   : > { %v1584_v0 = vmax.f32 %v1582_v51, %v1459_v54  ;;  %v1972_v50 = vmax.f32 %v1970_v30, %v1847_v37  ;;  %v1461_v5 = vpop.f32.mrb[33].mxu1  ;;  %v1849_v9 = vpop.f32.mrb[33].mxu0 }
 0x2be   : > { %v1621_v10 = vmax.f32 %v1619_v53, %v1461_v5  ;;  %v2009_v28 = vmax.f32 %v2007_v62, %v1849_v9  ;;  %v1463_v11 = vpop.f32.mrb[34].mxu1  ;;  %v1851_v56 = vpop.f32.mrb[34].mxu0  ;;  %2220 = vmatmul.mubr.bf16.gmra.mrb[92].mxu1 %v3973_v22  ;;  %2604 = vmatmul.mubr.bf16.gmra.mrb[92].mxu0 %v3973_v22 }
 0x2bf   : > { %v1585_v45 = vmax.f32 %v1583_v18, %v1463_v11  ;;  %v1973_v23 = vmax.f32 %v1971_v48, %v1851_v56  ;;  %v1465_v46 = vpop.f32.mrb[35].mxu1  ;;  %v1853_v13 = vpop.f32.mrb[35].mxu0  ;;  %2229 = vmatprep.mubr.bf16.mxu1 %v3316_v8  ;;  %2613 = vmatprep.mubr.bf16.mxu0 %v3316_v8 }
 0x2c0   : > { %v1622_v3 = vmax.f32 %v1620_v61, %v1465_v46  ;;  %v2010_v60 = vmax.f32 %v2008_v49, %v1853_v13 }
 0x2c4   : > { %v1469_v15 = vpop.f32.mrb[36].mxu1  ;;  %v1857_v16 = vpop.f32.mrb[36].mxu0 }
 0x2c5   : > { %v1586_v44 = vmax.f32 %v1584_v0, %v1469_v15  ;;  %v1974_v17 = vmax.f32 %v1972_v50, %v1857_v16  ;;  %v1471_v39 = vpop.f32.mrb[37].mxu1  ;;  %v1859_v32 = vpop.f32.mrb[37].mxu0 }
 0x2c6   : > { %v1623_v19 = vmax.f32 %v1621_v10, %v1471_v39  ;;  %v2011_v14 = vmax.f32 %v2009_v28, %v1859_v32  ;;  %v1473_v21 = vpop.f32.mrb[38].mxu1  ;;  %v1861_v22 = vpop.f32.mrb[38].mxu0  ;;  %2230 = vmatmul.mubr.bf16.gmra.mrb[96].mxu1 %v4017_v4  ;;  %2614 = vmatmul.mubr.bf16.gmra.mrb[96].mxu0 %v4017_v4 }
 0x2c7   : > { %v1587_v2 = vmax.f32 %v1585_v45, %v1473_v21  ;;  %v1975_v34 = vmax.f32 %v1973_v23, %v1861_v22  ;;  %v1475_v30 = vpop.f32.mrb[39].mxu1  ;;  %v1863_v35 = vpop.f32.mrb[39].mxu0  ;;  %2239 = vmatprep.mubr.bf16.mxu1 %v3316_v8  ;;  %2623 = vmatprep.mubr.bf16.mxu0 %v3316_v8 }
 0x2c8   : > { %v1624_v36 = vmax.f32 %v1622_v3, %v1475_v30  ;;  %v2012_v40 = vmax.f32 %v2010_v60, %v1863_v35 }
 0x2ce   : > { %2240 = vmatmul.mubr.bf16.gmra.mrb[100].mxu1 %v4015_v1  ;;  %2624 = vmatmul.mubr.bf16.gmra.mrb[100].mxu0 %v4015_v1 }
 0x2cf   : > { %2249 = vmatprep.mubr.bf16.mxu1 %v3316_v8  ;;  %2633 = vmatprep.mubr.bf16.mxu0 %v3316_v8 }
 0x2d6   : > { %2250 = vmatmul.mubr.bf16.gmra.mrb[104].mxu1 %v4057_v27  ;;  %2634 = vmatmul.mubr.bf16.gmra.mrb[104].mxu0 %v4057_v27 }
 0x2d7   : > { %2259 = vmatprep.mubr.bf16.mxu1 %v3316_v8  ;;  %2643 = vmatprep.mubr.bf16.mxu0 %v3316_v8 }
 0x2dd   : > { %v1479_v4 = vpop.f32.mrb[40].mxu1  ;;  %v1867_v62 = vpop.f32.mrb[40].mxu0 }
 0x2de   : > { %v1588_v29 = vmax.f32 %v1586_v44, %v1479_v4  ;;  %v1976_v47 = vmax.f32 %v1974_v17, %v1867_v62  ;;  %v1481_v24 = vpop.f32.mrb[41].mxu1  ;;  %v1869_v48 = vpop.f32.mrb[41].mxu0  ;;  %2260 = vmatmul.mubr.bf16.gmra.mrb[108].mxu1 %v4052_v43  ;;  %2644 = vmatmul.mubr.bf16.gmra.mrb[108].mxu0 %v4052_v43 }
 0x2df   : > { %v1625_v1 = vmax.f32 %v1623_v19, %v1481_v24  ;;  %v2013_v41 = vmax.f32 %v2011_v14, %v1869_v48  ;;  %v1483_v25 = vpop.f32.mrb[42].mxu1  ;;  %v1871_v52 = vpop.f32.mrb[42].mxu0  ;;  %2269 = vmatprep.mubr.bf16.mxu1 %v3316_v8  ;;  %2653 = vmatprep.mubr.bf16.mxu0 %v3316_v8 }
 0x2e0   : > { %v1589_v27 = vmax.f32 %v1587_v2, %v1483_v25  ;;  %v1977_v49 = vmax.f32 %v1975_v34, %v1871_v52  ;;  %v1485_v20 = vpop.f32.mrb[43].mxu1  ;;  %v1873_v51 = vpop.f32.mrb[43].mxu0 }
 0x2e1   : > { %v1626_v55 = vmax.f32 %v1624_v36, %v1485_v20  ;;  %v2014_v53 = vmax.f32 %v2012_v40, %v1873_v51 }
 0x2e5   : > { %v1489_v26 = vpop.f32.mrb[44].mxu1  ;;  %v1877_v18 = vpop.f32.mrb[44].mxu0 }
 0x2e6   : > { %v1590_v59 = vmax.f32 %v1588_v29, %v1489_v26  ;;  %v1978_v61 = vmax.f32 %v1976_v47, %v1877_v18  ;;  %v1491_v54 = vpop.f32.mrb[45].mxu1  ;;  %v1879_v43 = vpop.f32.mrb[45].mxu0  ;;  %2270 = vmatmul.mubr.bf16.gmra.mrb[112].mxu1 %v4085_v31  ;;  %2654 = vmatmul.mubr.bf16.gmra.mrb[112].mxu0 %v4085_v31 }
 0x2e7   : > { %v1627_v37 = vmax.f32 %v1625_v1, %v1491_v54  ;;  %v2015_v0 = vmax.f32 %v2013_v41, %v1879_v43  ;;  %v1493_v50 = vpop.f32.mrb[46].mxu1  ;;  %v1881_v5 = vpop.f32.mrb[46].mxu0  ;;  %2279 = vmatprep.mubr.bf16.mxu1 %v3316_v8  ;;  %2663 = vmatprep.mubr.bf16.mxu0 %v3316_v8 }
 0x2e8   : > { %v1591_v9 = vmax.f32 %v1589_v27, %v1493_v50  ;;  %v1979_v10 = vmax.f32 %v1977_v49, %v1881_v5  ;;  %v1495_v28 = vpop.f32.mrb[47].mxu1  ;;  %v1883_v11 = vpop.f32.mrb[47].mxu0 }
 0x2e9   : > { %v1628_v56 = vmax.f32 %v1626_v55, %v1495_v28  ;;  %v2016_v45 = vmax.f32 %v2014_v53, %v1883_v11 }
 0x2ee   : > { %2280 = vmatmul.mubr.bf16.gmra.mrb[116].mxu1 %v4083_v63  ;;  %2664 = vmatmul.mubr.bf16.gmra.mrb[116].mxu0 %v4083_v63 }
 0x2ef   : > { %2289 = vmatprep.mubr.bf16.mxu1 %v3316_v8  ;;  %2673 = vmatprep.mubr.bf16.mxu0 %v3316_v8 }
 0x2f6   : > { %2290 = vmatmul.mubr.bf16.gmra.mrb[120].mxu1 %v4101_v57  ;;  %2674 = vmatmul.mubr.bf16.gmra.mrb[120].mxu0 %v4101_v57 }
 0x2f7   : > { %2299 = vmatprep.mubr.bf16.mxu1 %v3316_v8  ;;  %2683 = vmatprep.mubr.bf16.mxu0 %v3316_v8 }
 0x2fe   : > { %2300 = vmatmul.mubr.bf16.gmra.mrb[124].mxu1 %v4099_v12  ;;  %2684 = vmatmul.mubr.bf16.gmra.mrb[124].mxu0 %v4099_v12 }
 0x2ff   : > { %2309 = vmatprep.mubr.bf16.mxu1 %v3316_v8  ;;  %2693 = vmatprep.mubr.bf16.mxu0 %v3316_v8 }
 0x302   : > { %v1499_v63 = vpop.f32.mrb[48].mxu1  ;;  %v1887_v31 = vpop.f32.mrb[48].mxu0 }
 0x303   : > { %v1592_v23 = vmax.f32 %v1590_v59, %v1499_v63  ;;  %v1980_v46 = vmax.f32 %v1978_v61, %v1887_v31  ;;  %v1501_v13 = vpop.f32.mrb[49].mxu1  ;;  %v1889_v3 = vpop.f32.mrb[49].mxu0 }
 0x304   : > { %v1629_v60 = vmax.f32 %v1627_v37, %v1501_v13  ;;  %v2017_v57 = vmax.f32 %v2015_v0, %v1889_v3  ;;  %v1503_v15 = vpop.f32.mrb[50].mxu1  ;;  %v1891_v16 = vpop.f32.mrb[50].mxu0 }
 0x305   : > { %v1593_v44 = vmax.f32 %v1591_v9, %v1503_v15  ;;  %v1981_v17 = vmax.f32 %v1979_v10, %v1891_v16  ;;  %v1505_v39 = vpop.f32.mrb[51].mxu1  ;;  %v1893_v32 = vpop.f32.mrb[51].mxu0 }
 0x306   : > { %v1630_v19 = vmax.f32 %v1628_v56, %v1505_v39  ;;  %v2018_v12 = vmax.f32 %v2016_v45, %v1893_v32  ;;  %2310 = vmatmul.mubr.bf16.gmra.mrb[128].mxu1 %v4117_v33  ;;  %2694 = vmatmul.mubr.bf16.gmra.mrb[128].mxu0 %v4117_v33 }
 0x307   : > { %2319 = vmatprep.mubr.bf16.mxu1 %v3316_v8  ;;  %2703 = vmatprep.mubr.bf16.mxu0 %v3316_v8 }
 0x30a   : > { %v1509_v14 = vpop.f32.mrb[52].mxu1  ;;  %v1897_v21 = vpop.f32.mrb[52].mxu0 }
 0x30b   : > { %v1594_v22 = vmax.f32 %v1592_v23, %v1509_v14  ;;  %v1982_v2 = vmax.f32 %v1980_v46, %v1897_v21  ;;  %v1511_v34 = vpop.f32.mrb[53].mxu1  ;;  %v1899_v30 = vpop.f32.mrb[53].mxu0 }
 0x30c   : > { %v1631_v35 = vmax.f32 %v1629_v60, %v1511_v34  ;;  %v2019_v36 = vmax.f32 %v2017_v57, %v1899_v30  ;;  %v1513_v40 = vpop.f32.mrb[54].mxu1  ;;  %v1901_v4 = vpop.f32.mrb[54].mxu0 }
 0x30d   : > { %v1595_v62 = vmax.f32 %v1593_v44, %v1513_v40  ;;  %v1983_v29 = vmax.f32 %v1981_v17, %v1901_v4  ;;  %v1515_v47 = vpop.f32.mrb[55].mxu1  ;;  %v1903_v24 = vpop.f32.mrb[55].mxu0 }
 0x30e   : > { %v1632_v48 = vmax.f32 %v1630_v19, %v1515_v47  ;;  %v2020_v33 = vmax.f32 %v2018_v12, %v1903_v24  ;;  %2320 = vmatmul.mubr.bf16.gmra.mrb[132].mxu1 %v4115_v58  ;;  %2704 = vmatmul.mubr.bf16.gmra.mrb[132].mxu0 %v4115_v58 }
 0x30f   : > { %2329 = vmatprep.mubr.bf16.mxu1 %v3316_v8  ;;  %2713 = vmatprep.mubr.bf16.mxu0 %v3316_v8 }
 0x316   : > { %2330 = vmatmul.mubr.bf16.gmra.mrb[136].mxu1 %v4133_v7  ;;  %2714 = vmatmul.mubr.bf16.gmra.mrb[136].mxu0 %v4133_v7 }
 0x317   : > { %2339 = vmatprep.mubr.bf16.mxu1 %v3316_v8  ;;  %2723 = vmatprep.mubr.bf16.mxu0 %v3316_v8 }
 0x31e   : > { %2340 = vmatmul.mubr.bf16.gmra.mrb[140].mxu1 %v4131_v6  ;;  %2724 = vmatmul.mubr.bf16.gmra.mrb[140].mxu0 %v4131_v6 }
 0x323   : > { %v1519_v1 = vpop.f32.mrb[56].mxu1  ;;  %v1907_v41 = vpop.f32.mrb[56].mxu0 }
 0x324   : > { %v1596_v25 = vmax.f32 %v1594_v22, %v1519_v1  ;;  %v1984_v58 = vmax.f32 %v1982_v2, %v1907_v41  ;;  %v1521_v52 = vpop.f32.mrb[57].mxu1  ;;  %v1909_v27 = vpop.f32.mrb[57].mxu0 }
 0x325   : > { %v1633_v49 = vmax.f32 %v1631_v35, %v1521_v52  ;;  %v2021_v20 = vmax.f32 %v2019_v36, %v1909_v27  ;;  %v1523_v51 = vpop.f32.mrb[58].mxu1  ;;  %v1911_v55 = vpop.f32.mrb[58].mxu0 }
 0x326   : > { %v1597_v53 = vmax.f32 %v1595_v62, %v1523_v51  ;;  %v1985_v7 = vmax.f32 %v1983_v29, %v1911_v55  ;;  %v1525_v26 = vpop.f32.mrb[59].mxu1  ;;  %v1913_v18 = vpop.f32.mrb[59].mxu0 }
 0x327   : > { %v1634_v59 = vmax.f32 %v1632_v48, %v1525_v26  ;;  %v2022_v8 = vmax.f32 %v2020_v33, %v1913_v18 }
 0x32b   : > { %v1529_v61 = vpop.f32.mrb[60].mxu1  ;;  %v1917_v54 = vpop.f32.mrb[60].mxu0 }
 0x32c   : > { %v1598_v43 = vmax.f32 %v1596_v25, %v1529_v61  ;;  %v1986_v6 = vmax.f32 %v1984_v58, %v1917_v54  ;;  %v1531_v37 = vpop.f32.mrb[61].mxu1  ;;  %v1919_v0 = vpop.f32.mrb[61].mxu0 }
 0x32d   : > { %v1635_v50 = vmax.f32 %v1633_v49, %v1531_v37  ;;  %v2023_v5 = vmax.f32 %v2021_v20, %v1919_v0  ;;  %v1533_v9 = vpop.f32.mrb[62].mxu1  ;;  %v1921_v10 = vpop.f32.mrb[62].mxu0 }
 0x32e   : > { %v1599_v28 = vmax.f32 %v1597_v53, %v1533_v9  ;;  %v1987_v11 = vmax.f32 %v1985_v7, %v1921_v10  ;;  %v1535_v56 = vpop.f32.mrb[63].mxu1  ;;  %v1923_v45 = vpop.f32.mrb[63].mxu0 }
 0x32f   : > { %v1636_v63 = vmax.f32 %v1634_v59, %v1535_v56  ;;  %v2024_v31 = vmax.f32 %v2022_v8, %v1923_v45 }
 0x348   : > { %v1539_v23 = vpop.f32.mrb[64].mxu1  ;;  %v1927_v46 = vpop.f32.mrb[64].mxu0 }
 0x349   : > { %v1600_v13 = vmax.f32 %v1598_v43, %v1539_v23  ;;  %v1988_v3 = vmax.f32 %v1986_v6, %v1927_v46  ;;  %v1541_v60 = vpop.f32.mrb[65].mxu1  ;;  %v1929_v57 = vpop.f32.mrb[65].mxu0 }
 0x34a   : > { %v1637_v15 = vmax.f32 %v1635_v50, %v1541_v60  ;;  %v2025_v16 = vmax.f32 %v2023_v5, %v1929_v57  ;;  %v1543_v44 = vpop.f32.mrb[66].mxu1  ;;  %v1931_v17 = vpop.f32.mrb[66].mxu0 }
 0x34b   : > { %v1601_v39 = vmax.f32 %v1599_v28, %v1543_v44  ;;  %v1989_v32 = vmax.f32 %v1987_v11, %v1931_v17  ;;  %v1545_v19 = vpop.f32.mrb[67].mxu1  ;;  %v1933_v12 = vpop.f32.mrb[67].mxu0  ;;  %v3317_v17 = vmov 1966171168  }
 0x34c   : > { %v1638_v14 = vmax.f32 %v1636_v63, %v1545_v19  ;;  %v2026_v21 = vmax.f32 %v2024_v31, %v1933_v12 }
 0x350   : > { %v1549_v22 = vpop.f32.mrb[68].mxu1  ;;  %v1937_v2 = vpop.f32.mrb[68].mxu0 }
 0x351   : > { %v1602_v34 = vmax.f32 %v1600_v13, %v1549_v22  ;;  %v1990_v30 = vmax.f32 %v1988_v3, %v1937_v2  ;;  %v1551_v35 = vpop.f32.mrb[69].mxu1  ;;  %v1939_v36 = vpop.f32.mrb[69].mxu0 }
 0x352   : > { %v1639_v40 = vmax.f32 %v1637_v15, %v1551_v35  ;;  %v2027_v4 = vmax.f32 %v2025_v16, %v1939_v36  ;;  %v1553_v62 = vpop.f32.mrb[70].mxu1  ;;  %v1941_v29 = vpop.f32.mrb[70].mxu0 }
 0x353   : > { %v1603_v47 = vmax.f32 %v1601_v39, %v1553_v62  ;;  %v1991_v24 = vmax.f32 %v1989_v32, %v1941_v29  ;;  %v1555_v48 = vpop.f32.mrb[71].mxu1  ;;  %v1943_v33 = vpop.f32.mrb[71].mxu0  ;;  %v1657_v39 = vunpack.c.l.s4 %v3317_v17 }
 0x354   : > { %v1640_v1 = vmax.f32 %v1638_v14, %v1555_v48  ;;  %v2028_v41 = vmax.f32 %v2026_v21, %v1943_v33 }
 0x369   : > { %v1559_v25 = vpop.f32.mrb[72].mxu1  ;;  %v1947_v58 = vpop.f32.mrb[72].mxu0 }
 0x36a   : > { %v1604_v52 = vmax.f32 %v1602_v34, %v1559_v25  ;;  %v1992_v27 = vmax.f32 %v1990_v30, %v1947_v58  ;;  %v1561_v49 = vpop.f32.mrb[73].mxu1  ;;  %v1949_v20 = vpop.f32.mrb[73].mxu0 }
 0x36b   : > { %v1641_v51 = vmax.f32 %v1639_v40, %v1561_v49  ;;  %v2029_v55 = vmax.f32 %v2027_v4, %v1949_v20  ;;  %v1563_v53 = vpop.f32.mrb[74].mxu1  ;;  %v1951_v7 = vpop.f32.mrb[74].mxu0 }
 0x36c   : > { %v1605_v26 = vmax.f32 %v1603_v47, %v1563_v53  ;;  %v1993_v18 = vmax.f32 %v1991_v24, %v1951_v7  ;;  %v1565_v59 = vpop.f32.mrb[75].mxu1  ;;  %v1953_v8 = vpop.f32.mrb[75].mxu0  ;;  %v1658_v24 = vunpack.c.0.s8 %v1657_v39 }
 0x36d   : > { %v1642_v61 = vmax.f32 %v1640_v1, %v1565_v59  ;;  %v2030_v54 = vmax.f32 %v2028_v41, %v1953_v8 }
 0x36e   : > { %v4206_v49 = vsub.s32 %v1658_v24, %v3546_v42 }
 0x371   : > { %v1569_v43 = vpop.f32.mrb[76].mxu1  ;;  %v1957_v6 = vpop.f32.mrb[76].mxu0 }
 0x372   : > { %v1606_v37 = vmax.f32 %v1604_v52, %v1569_v43  ;;  %v1994_v0 = vmax.f32 %v1992_v27, %v1957_v6  ;;  %v1571_v50 = vpop.f32.mrb[77].mxu1  ;;  %v1959_v5 = vpop.f32.mrb[77].mxu0 }
 0x373   : > { %v1643_v9 = vmax.f32 %v1641_v51, %v1571_v50  ;;  %v2031_v10 = vmax.f32 %v2029_v55, %v1959_v5  ;;  %v1573_v28 = vpop.f32.mrb[78].mxu1  ;;  %v1961_v11 = vpop.f32.mrb[78].mxu0 }
 0x374   : > { %v1607_v56 = vmax.f32 %v1605_v26, %v1573_v28  ;;  %v1995_v45 = vmax.f32 %v1993_v18, %v1961_v11  ;;  %v1575_v63 = vpop.f32.mrb[79].mxu1  ;;  %v1963_v31 = vpop.f32.mrb[79].mxu0 }
 0x375   : > { %v1644_v23 = vmax.f32 %v1642_v61, %v1575_v63  ;;  %v2032_v46 = vmax.f32 %v2030_v54, %v1963_v31  ;;  %v1652_v31 = vld [vmem:[%s3434_s12] sm:$0x3] }
 0x376   : > { %v1608_v13 = vmax.f32 %v1606_v37, %v1607_v56  ;;  %v1996_v3 = vmax.f32 %v1994_v0, %v1995_v45 }
 0x377   : > { %v1645_v60 = vmax.f32 %v1643_v9, %v1644_v23  ;;  %v2033_v57 = vmax.f32 %v2031_v10, %v2032_v46  ;;  %v2040_v23 = vld [vmem:[%s3434_s12 + $0x2] sm:$0x3] }
 0x378   : > { %v1609_v15 = vrot.slane %v1608_v13, 4  ;;  %v1997_v16 = vrot.slane %v1996_v3, 4 }
 0x379   : > { %v1646_v44 = vrot.slane %v1645_v60, 4  ;;  %v2034_v32 = vrot.slane %v2033_v57, 4  ;;  %v2191_v19 = vpop.f32.mrb[80].mxu1  ;;  %v2575_v12 = vpop.f32.mrb[80].mxu0 }
 0x37a   : > { %v1610_v14 = vmax.f32 %v1608_v13, %v1609_v15  ;;  %v1998_v21 = vmax.f32 %v1996_v3, %v1997_v16  ;;  %v2193_v22 = vpop.f32.mrb[81].mxu1  ;;  %v2577_v2 = vpop.f32.mrb[81].mxu0 }
 0x37b   : > { %v1647_v34 = vmax.f32 %v1645_v60, %v1646_v44  ;;  %v2035_v30 = vmax.f32 %v2033_v57, %v2034_v32  ;;  %v2195_v35 = vpop.f32.mrb[82].mxu1  ;;  %v2579_v36 = vpop.f32.mrb[82].mxu0 }
 0x37c   : > { %v1611_v40 = vrot.slane %v1610_v14, 2  ;;  %v1999_v4 = vrot.slane %v1998_v21, 2  ;;  %v2197_v62 = vpop.f32.mrb[83].mxu1  ;;  %v2581_v29 = vpop.f32.mrb[83].mxu0 }
 0x37d   : > { %v1648_v47 = vrot.slane %v1647_v34, 2  ;;  %v2036_v48 = vrot.slane %v2035_v30, 2 }
 0x37e   : > { %v1612_v33 = vmax.f32 %v1610_v14, %v1611_v40  ;;  %v2000_v1 = vmax.f32 %v1998_v21, %v1999_v4 }
 0x37f   : > { %v1649_v41 = vmax.f32 %v1647_v34, %v1648_v47  ;;  %v2037_v25 = vmax.f32 %v2035_v30, %v2036_v48 }
 0x380   : > { %v1613_v58 = vrot.slane %v1612_v33, 1  ;;  %v2001_v52 = vrot.slane %v2000_v1, 1 }
 0x381   : > { %v1650_v27 = vrot.slane %v1649_v41, 1  ;;  %v2038_v20 = vrot.slane %v2037_v25, 1  ;;  %v2201_v51 = vpop.f32.mrb[84].mxu1  ;;  %v2585_v55 = vpop.f32.mrb[84].mxu0 }
 0x382   : > { %v1614_v53 = vmax.f32 %v1612_v33, %v1613_v58  ;;  %v2002_v7 = vmax.f32 %v2000_v1, %v2001_v52  ;;  %v2350_v26 = vmax.f32 %v2191_v19, %v2201_v51  ;;  %v2734_v18 = vmax.f32 %v2575_v12, %v2585_v55  ;;  %v2203_v59 = vpop.f32.mrb[85].mxu1  ;;  %v2587_v8 = vpop.f32.mrb[85].mxu0 }
 0x383   : > { %v1651_v61 = vmax.f32 %v1649_v41, %v1650_v27  ;;  %v2039_v54 = vmax.f32 %v2037_v25, %v2038_v20  ;;  %v2387_v43 = vmax.f32 %v2193_v22, %v2203_v59  ;;  %v2771_v6 = vmax.f32 %v2577_v2, %v2587_v8  ;;  %v2205_v37 = vpop.f32.mrb[86].mxu1  ;;  %v2589_v0 = vpop.f32.mrb[86].mxu0 }
 0x384   : > { %v2351_v50 = vmax.f32 %v2195_v35, %v2205_v37  ;;  %v2735_v42 = vmax.f32 %v2579_v36, %v2589_v0  ;;  %v2207_v5 = vpop.f32.mrb[87].mxu1  ;;  %v2591_v9 = vpop.f32.mrb[87].mxu0 }
 0x385   : > { %v1655_v10 = vcombine.low %v1614_v53, %v1651_v61  ;;  %v2043_v28 = vcombine.low %v2002_v7, %v2039_v54  ;;  %v2388_v11 = vmax.f32 %v2197_v62, %v2207_v5  ;;  %v2772_v56 = vmax.f32 %v2581_v29, %v2591_v9 }
 0x387   : > { %v1662_v45 = vrot.slane %v1655_v10, %v4206_v49  ;;  %v2050_v63 = vrot.slane %v2043_v28, %v4206_v49 }
 0x389   : > { %v1669_v46 = vrot.slane %v1662_v45, %v4206_v49  ;;  %v2057_v13 = vrot.slane %v2050_v63, %v4206_v49  ;;  %v2211_v3 = vpop.f32.mrb[88].mxu1  ;;  %v2595_v60 = vpop.f32.mrb[88].mxu0 }
 0x38a   : > { %v2352_v57 = vmax.f32 %v2350_v26, %v2211_v3  ;;  %v2736_v15 = vmax.f32 %v2734_v18, %v2595_v60  ;;  %v2213_v16 = vpop.f32.mrb[89].mxu1  ;;  %v2597_v44 = vpop.f32.mrb[89].mxu0 }
 0x38b   : > { %v2389_v39 = vmax.f32 %v2387_v43, %v2213_v16  ;;  %v2773_v32 = vmax.f32 %v2771_v6, %v2597_v44  ;;  %v2215_v19 = vpop.f32.mrb[90].mxu1  ;;  %v2599_v12 = vpop.f32.mrb[90].mxu0  ;;  %v1671_v14 = vmax.f32 %v1652_v31, %v1669_v46  ;;  %v2059_v21 = vmax.f32 %v2040_v23, %v2057_v13 }
 0x38c   : > { %v2353_v22 = vmax.f32 %v2351_v50, %v2215_v19  ;;  %v2737_v2 = vmax.f32 %v2735_v42, %v2599_v12  ;;  %v2217_v34 = vpop.f32.mrb[91].mxu1  ;;  %v2601_v30 = vpop.f32.mrb[91].mxu0 }
 0x38d   : > { %v2390_v35 = vmax.f32 %v2388_v11, %v2217_v34  ;;  %v2774_v36 = vmax.f32 %v2772_v56, %v2601_v30  ;;  %1676 = vst.msk [vmem:[%s3434_s12] sm:$0x3] %vm4215_vm1, %v1671_v14  ;;  %2060 = vst.msk [vmem:[%s3434_s12 + $0x2] sm:$0x3] %vm4215_vm1, %v2059_v21 }
 0x391   : > { %v2221_v38 = vpop.f32.mrb[92].mxu1  ;;  %v2605_v40 = vpop.f32.mrb[92].mxu0 }
 0x392   : > { %v2354_v4 = vmax.f32 %v2352_v57, %v2221_v38  ;;  %v2738_v62 = vmax.f32 %v2736_v15, %v2605_v40  ;;  %v2223_v29 = vpop.f32.mrb[93].mxu1  ;;  %v2607_v47 = vpop.f32.mrb[93].mxu0 }
 0x393   : > { %v2391_v24 = vmax.f32 %v2389_v39, %v2223_v29  ;;  %v2775_v48 = vmax.f32 %v2773_v32, %v2607_v47  ;;  %v2225_v33 = vpop.f32.mrb[94].mxu1  ;;  %v2609_v1 = vpop.f32.mrb[94].mxu0 }
 0x394   : > { %v2355_v41 = vmax.f32 %v2353_v22, %v2225_v33  ;;  %v2739_v25 = vmax.f32 %v2737_v2, %v2609_v1  ;;  %v2227_v58 = vpop.f32.mrb[95].mxu1  ;;  %v2611_v52 = vpop.f32.mrb[95].mxu0 }
 0x395   : > { %v2392_v27 = vmax.f32 %v2390_v35, %v2227_v58  ;;  %v2776_v20 = vmax.f32 %v2774_v36, %v2611_v52 }
 0x399   : > { %v2231_v51 = vpop.f32.mrb[96].mxu1  ;;  %v2615_v55 = vpop.f32.mrb[96].mxu0 }
 0x39a   : > { %v2356_v53 = vmax.f32 %v2354_v4, %v2231_v51  ;;  %v2740_v7 = vmax.f32 %v2738_v62, %v2615_v55  ;;  %v2233_v26 = vpop.f32.mrb[97].mxu1  ;;  %v2617_v18 = vpop.f32.mrb[97].mxu0 }
 0x39b   : > { %v2393_v59 = vmax.f32 %v2391_v24, %v2233_v26  ;;  %v2777_v8 = vmax.f32 %v2775_v48, %v2617_v18  ;;  %v2235_v61 = vpop.f32.mrb[98].mxu1  ;;  %v2619_v54 = vpop.f32.mrb[98].mxu0 }
 0x39c   : > { %v2357_v43 = vmax.f32 %v2355_v41, %v2235_v61  ;;  %v2741_v6 = vmax.f32 %v2739_v25, %v2619_v54  ;;  %v2237_v37 = vpop.f32.mrb[99].mxu1  ;;  %v2621_v0 = vpop.f32.mrb[99].mxu0 }
 0x39d   : > { %v2394_v50 = vmax.f32 %v2392_v27, %v2237_v37  ;;  %v2778_v42 = vmax.f32 %v2776_v20, %v2621_v0 }
 0x3a1   : > { %v2241_v5 = vpop.f32.mrb[100].mxu1  ;;  %v2625_v9 = vpop.f32.mrb[100].mxu0 }
 0x3a2   : > { %v2358_v10 = vmax.f32 %v2356_v53, %v2241_v5  ;;  %v2742_v28 = vmax.f32 %v2740_v7, %v2625_v9  ;;  %v2243_v11 = vpop.f32.mrb[101].mxu1  ;;  %v2627_v56 = vpop.f32.mrb[101].mxu0 }
 0x3a3   : > { %v2395_v45 = vmax.f32 %v2393_v59, %v2243_v11  ;;  %v2779_v63 = vmax.f32 %v2777_v8, %v2627_v56  ;;  %v2245_v31 = vpop.f32.mrb[102].mxu1  ;;  %v2629_v23 = vpop.f32.mrb[102].mxu0 }
 0x3a4   : > { %v2359_v46 = vmax.f32 %v2357_v43, %v2245_v31  ;;  %v2743_v13 = vmax.f32 %v2741_v6, %v2629_v23  ;;  %v2247_v3 = vpop.f32.mrb[103].mxu1  ;;  %v2631_v60 = vpop.f32.mrb[103].mxu0 }
 0x3a5   : > { %v2396_v57 = vmax.f32 %v2394_v50, %v2247_v3  ;;  %v2780_v15 = vmax.f32 %v2778_v42, %v2631_v60 }
 0x3a9   : > { %v2251_v16 = vpop.f32.mrb[104].mxu1  ;;  %v2635_v44 = vpop.f32.mrb[104].mxu0 }
 0x3aa   : > { %v2360_v39 = vmax.f32 %v2358_v10, %v2251_v16  ;;  %v2744_v32 = vmax.f32 %v2742_v28, %v2635_v44  ;;  %v2253_v19 = vpop.f32.mrb[105].mxu1  ;;  %v2637_v12 = vpop.f32.mrb[105].mxu0 }
 0x3ab   : > { %v2397_v14 = vmax.f32 %v2395_v45, %v2253_v19  ;;  %v2781_v21 = vmax.f32 %v2779_v63, %v2637_v12  ;;  %v2255_v22 = vpop.f32.mrb[106].mxu1  ;;  %v2639_v2 = vpop.f32.mrb[106].mxu0 }
 0x3ac   : > { %v2361_v34 = vmax.f32 %v2359_v46, %v2255_v22  ;;  %v2745_v30 = vmax.f32 %v2743_v13, %v2639_v2  ;;  %v2257_v35 = vpop.f32.mrb[107].mxu1  ;;  %v2641_v36 = vpop.f32.mrb[107].mxu0 }
 0x3ad   : > { %v2398_v38 = vmax.f32 %v2396_v57, %v2257_v35  ;;  %v2782_v40 = vmax.f32 %v2780_v15, %v2641_v36 }
 0x3b1   : > { %v2261_v4 = vpop.f32.mrb[108].mxu1  ;;  %v2645_v62 = vpop.f32.mrb[108].mxu0 }
 0x3b2   : > { %v2362_v29 = vmax.f32 %v2360_v39, %v2261_v4  ;;  %v2746_v47 = vmax.f32 %v2744_v32, %v2645_v62  ;;  %v2263_v24 = vpop.f32.mrb[109].mxu1  ;;  %v2647_v48 = vpop.f32.mrb[109].mxu0 }
 0x3b3   : > { %v2399_v33 = vmax.f32 %v2397_v14, %v2263_v24  ;;  %v2783_v1 = vmax.f32 %v2781_v21, %v2647_v48  ;;  %v2265_v41 = vpop.f32.mrb[110].mxu1  ;;  %v2649_v25 = vpop.f32.mrb[110].mxu0 }
 0x3b4   : > { %v2363_v58 = vmax.f32 %v2361_v34, %v2265_v41  ;;  %v2747_v52 = vmax.f32 %v2745_v30, %v2649_v25  ;;  %v2267_v27 = vpop.f32.mrb[111].mxu1  ;;  %v2651_v20 = vpop.f32.mrb[111].mxu0 }
 0x3b5   : > { %v2400_v51 = vmax.f32 %v2398_v38, %v2267_v27  ;;  %v2784_v55 = vmax.f32 %v2782_v40, %v2651_v20 }
 0x3b9   : > { %v2271_v53 = vpop.f32.mrb[112].mxu1  ;;  %v2655_v7 = vpop.f32.mrb[112].mxu0 }
 0x3ba   : > { %v2364_v26 = vmax.f32 %v2362_v29, %v2271_v53  ;;  %v2748_v18 = vmax.f32 %v2746_v47, %v2655_v7  ;;  %v2273_v59 = vpop.f32.mrb[113].mxu1  ;;  %v2657_v8 = vpop.f32.mrb[113].mxu0 }
 0x3bb   : > { %v2401_v61 = vmax.f32 %v2399_v33, %v2273_v59  ;;  %v2785_v54 = vmax.f32 %v2783_v1, %v2657_v8  ;;  %v2275_v43 = vpop.f32.mrb[114].mxu1  ;;  %v2659_v6 = vpop.f32.mrb[114].mxu0 }
 0x3bc   : > { %v2365_v37 = vmax.f32 %v2363_v58, %v2275_v43  ;;  %v2749_v0 = vmax.f32 %v2747_v52, %v2659_v6  ;;  %v2277_v50 = vpop.f32.mrb[115].mxu1  ;;  %v2661_v42 = vpop.f32.mrb[115].mxu0 }
 0x3bd   : > { %v2402_v5 = vmax.f32 %v2400_v51, %v2277_v50  ;;  %v2786_v9 = vmax.f32 %v2784_v55, %v2661_v42 }
 0x3c1   : > { %v2281_v10 = vpop.f32.mrb[116].mxu1  ;;  %v2665_v28 = vpop.f32.mrb[116].mxu0 }
 0x3c2   : > { %v2366_v11 = vmax.f32 %v2364_v26, %v2281_v10  ;;  %v2750_v56 = vmax.f32 %v2748_v18, %v2665_v28  ;;  %v2283_v45 = vpop.f32.mrb[117].mxu1  ;;  %v2667_v63 = vpop.f32.mrb[117].mxu0 }
 0x3c3   : > { %v2403_v31 = vmax.f32 %v2401_v61, %v2283_v45  ;;  %v2787_v23 = vmax.f32 %v2785_v54, %v2667_v63  ;;  %v2285_v46 = vpop.f32.mrb[118].mxu1  ;;  %v2669_v13 = vpop.f32.mrb[118].mxu0 }
 0x3c4   : > { %v2367_v3 = vmax.f32 %v2365_v37, %v2285_v46  ;;  %v2751_v60 = vmax.f32 %v2749_v0, %v2669_v13  ;;  %v2287_v57 = vpop.f32.mrb[119].mxu1  ;;  %v2671_v15 = vpop.f32.mrb[119].mxu0 }
 0x3c5   : > { %v2404_v16 = vmax.f32 %v2402_v5, %v2287_v57  ;;  %v2788_v44 = vmax.f32 %v2786_v9, %v2671_v15 }
 0x3c9   : > { %v2291_v39 = vpop.f32.mrb[120].mxu1  ;;  %v2675_v32 = vpop.f32.mrb[120].mxu0 }
 0x3ca   : > { %v2368_v19 = vmax.f32 %v2366_v11, %v2291_v39  ;;  %v2752_v12 = vmax.f32 %v2750_v56, %v2675_v32  ;;  %v2293_v14 = vpop.f32.mrb[121].mxu1  ;;  %v2677_v21 = vpop.f32.mrb[121].mxu0 }
 0x3cb   : > { %v2405_v22 = vmax.f32 %v2403_v31, %v2293_v14  ;;  %v2789_v2 = vmax.f32 %v2787_v23, %v2677_v21  ;;  %v2295_v34 = vpop.f32.mrb[122].mxu1  ;;  %v2679_v30 = vpop.f32.mrb[122].mxu0 }
 0x3cc   : > { %v2369_v35 = vmax.f32 %v2367_v3, %v2295_v34  ;;  %v2753_v36 = vmax.f32 %v2751_v60, %v2679_v30  ;;  %v2297_v38 = vpop.f32.mrb[123].mxu1  ;;  %v2681_v40 = vpop.f32.mrb[123].mxu0 }
 0x3cd   : > { %v2406_v4 = vmax.f32 %v2404_v16, %v2297_v38  ;;  %v2790_v62 = vmax.f32 %v2788_v44, %v2681_v40 }
 0x3d1   : > { %v2301_v29 = vpop.f32.mrb[124].mxu1  ;;  %v2685_v47 = vpop.f32.mrb[124].mxu0 }
 0x3d2   : > { %v2370_v24 = vmax.f32 %v2368_v19, %v2301_v29  ;;  %v2754_v48 = vmax.f32 %v2752_v12, %v2685_v47  ;;  %v2303_v33 = vpop.f32.mrb[125].mxu1  ;;  %v2687_v1 = vpop.f32.mrb[125].mxu0 }
 0x3d3   : > { %v2407_v41 = vmax.f32 %v2405_v22, %v2303_v33  ;;  %v2791_v25 = vmax.f32 %v2789_v2, %v2687_v1  ;;  %v2305_v58 = vpop.f32.mrb[126].mxu1  ;;  %v2689_v52 = vpop.f32.mrb[126].mxu0 }
 0x3d4   : > { %v2371_v27 = vmax.f32 %v2369_v35, %v2305_v58  ;;  %v2755_v20 = vmax.f32 %v2753_v36, %v2689_v52  ;;  %v2307_v51 = vpop.f32.mrb[127].mxu1  ;;  %v2691_v55 = vpop.f32.mrb[127].mxu0 }
 0x3d5   : > { %v2408_v53 = vmax.f32 %v2406_v4, %v2307_v51  ;;  %v2792_v7 = vmax.f32 %v2790_v62, %v2691_v55 }
 0x3d9   : > { %v2311_v26 = vpop.f32.mrb[128].mxu1  ;;  %v2695_v18 = vpop.f32.mrb[128].mxu0 }
 0x3da   : > { %v2372_v59 = vmax.f32 %v2370_v24, %v2311_v26  ;;  %v2756_v8 = vmax.f32 %v2754_v48, %v2695_v18  ;;  %v2313_v61 = vpop.f32.mrb[129].mxu1  ;;  %v2697_v54 = vpop.f32.mrb[129].mxu0 }
 0x3db   : > { %v2409_v43 = vmax.f32 %v2407_v41, %v2313_v61  ;;  %v2793_v6 = vmax.f32 %v2791_v25, %v2697_v54  ;;  %v2315_v37 = vpop.f32.mrb[130].mxu1  ;;  %v2699_v0 = vpop.f32.mrb[130].mxu0 }
 0x3dc   : > { %v2373_v50 = vmax.f32 %v2371_v27, %v2315_v37  ;;  %v2757_v42 = vmax.f32 %v2755_v20, %v2699_v0  ;;  %v2317_v5 = vpop.f32.mrb[131].mxu1  ;;  %v2701_v9 = vpop.f32.mrb[131].mxu0 }
 0x3dd   : > { %v2410_v10 = vmax.f32 %v2408_v53, %v2317_v5  ;;  %v2794_v28 = vmax.f32 %v2792_v7, %v2701_v9 }
 0x3e1   : > { %v2321_v11 = vpop.f32.mrb[132].mxu1  ;;  %v2705_v56 = vpop.f32.mrb[132].mxu0 }
 0x3e2   : > { %v2374_v45 = vmax.f32 %v2372_v59, %v2321_v11  ;;  %v2758_v63 = vmax.f32 %v2756_v8, %v2705_v56  ;;  %v2323_v31 = vpop.f32.mrb[133].mxu1  ;;  %v2707_v23 = vpop.f32.mrb[133].mxu0 }
 0x3e3   : > { %v2411_v46 = vmax.f32 %v2409_v43, %v2323_v31  ;;  %v2795_v13 = vmax.f32 %v2793_v6, %v2707_v23  ;;  %v2325_v3 = vpop.f32.mrb[134].mxu1  ;;  %v2709_v60 = vpop.f32.mrb[134].mxu0 }
 0x3e4   : > { %v2375_v57 = vmax.f32 %v2373_v50, %v2325_v3  ;;  %v2759_v15 = vmax.f32 %v2757_v42, %v2709_v60  ;;  %v2327_v16 = vpop.f32.mrb[135].mxu1  ;;  %v2711_v44 = vpop.f32.mrb[135].mxu0 }
 0x3e5   : > { %v2412_v39 = vmax.f32 %v2410_v10, %v2327_v16  ;;  %v2796_v32 = vmax.f32 %v2794_v28, %v2711_v44 }
 0x3e9   : > { %v2331_v19 = vpop.f32.mrb[136].mxu1  ;;  %v2715_v12 = vpop.f32.mrb[136].mxu0 }
 0x3ea   : > { %v2376_v14 = vmax.f32 %v2374_v45, %v2331_v19  ;;  %v2760_v21 = vmax.f32 %v2758_v63, %v2715_v12  ;;  %v2333_v22 = vpop.f32.mrb[137].mxu1  ;;  %v2717_v2 = vpop.f32.mrb[137].mxu0 }
 0x3eb   : > { %v2413_v34 = vmax.f32 %v2411_v46, %v2333_v22  ;;  %v2797_v30 = vmax.f32 %v2795_v13, %v2717_v2  ;;  %v2335_v35 = vpop.f32.mrb[138].mxu1  ;;  %v2719_v36 = vpop.f32.mrb[138].mxu0 }
 0x3ec   : > { %v2377_v38 = vmax.f32 %v2375_v57, %v2335_v35  ;;  %v2761_v40 = vmax.f32 %v2759_v15, %v2719_v36  ;;  %v2337_v4 = vpop.f32.mrb[139].mxu1  ;;  %v2721_v62 = vpop.f32.mrb[139].mxu0 }
 0x3ed   : > { %v2414_v29 = vmax.f32 %v2412_v39, %v2337_v4  ;;  %v2798_v47 = vmax.f32 %v2796_v32, %v2721_v62 }
 0x3f1   : > { %v2341_v24 = vpop.f32.mrb[140].mxu1  ;;  %v2725_v48 = vpop.f32.mrb[140].mxu0 }
 0x3f2   : > { %v2378_v33 = vmax.f32 %v2376_v14, %v2341_v24  ;;  %v2762_v1 = vmax.f32 %v2760_v21, %v2725_v48  ;;  %v2343_v41 = vpop.f32.mrb[141].mxu1  ;;  %v2727_v25 = vpop.f32.mrb[141].mxu0  ;;  %v2424_v14 = vld [vmem:[%s3434_s12 + $0x4] sm:$0x3]  ;;  %v2808_v21 = vld [vmem:[%s3434_s12 + $0x6] sm:$0x3] }
 0x3f3   : > { %v2415_v58 = vmax.f32 %v2413_v34, %v2343_v41  ;;  %v2799_v52 = vmax.f32 %v2797_v30, %v2727_v25  ;;  %v2345_v27 = vpop.f32.mrb[142].mxu1  ;;  %v2729_v20 = vpop.f32.mrb[142].mxu0 }
 0x3f4   : > { %v2379_v51 = vmax.f32 %v2377_v38, %v2345_v27  ;;  %v2763_v55 = vmax.f32 %v2761_v40, %v2729_v20  ;;  %v2347_v53 = vpop.f32.mrb[143].mxu1  ;;  %v2731_v7 = vpop.f32.mrb[143].mxu0 }
 0x3f5   : > { %v2416_v26 = vmax.f32 %v2414_v29, %v2347_v53  ;;  %v2800_v18 = vmax.f32 %v2798_v47, %v2731_v7 }
 0x3f6   : > { %v2380_v59 = vmax.f32 %v2378_v33, %v2379_v51  ;;  %v2764_v8 = vmax.f32 %v2762_v1, %v2763_v55 }
 0x3f7   : > { %v2417_v61 = vmax.f32 %v2415_v58, %v2416_v26  ;;  %v2801_v54 = vmax.f32 %v2799_v52, %v2800_v18 }
 0x3f8   : > { %v2381_v43 = vrot.slane %v2380_v59, 4  ;;  %v2765_v6 = vrot.slane %v2764_v8, 4 }
 0x3f9   : > { %v2418_v37 = vrot.slane %v2417_v61, 4  ;;  %v2802_v0 = vrot.slane %v2801_v54, 4 }
 0x3fa   : > { %v2382_v50 = vmax.f32 %v2380_v59, %v2381_v43  ;;  %v2766_v42 = vmax.f32 %v2764_v8, %v2765_v6 }
 0x3fb   : > { %v2419_v5 = vmax.f32 %v2417_v61, %v2418_v37  ;;  %v2803_v9 = vmax.f32 %v2801_v54, %v2802_v0 }
 0x3fc   : > { %v2383_v10 = vrot.slane %v2382_v50, 2  ;;  %v2767_v28 = vrot.slane %v2766_v42, 2 }
 0x3fd   : > { %v2420_v11 = vrot.slane %v2419_v5, 2  ;;  %v2804_v56 = vrot.slane %v2803_v9, 2 }
 0x3fe   : > { %v2384_v45 = vmax.f32 %v2382_v50, %v2383_v10  ;;  %v2768_v63 = vmax.f32 %v2766_v42, %v2767_v28 }
 0x3ff   : > { %v2421_v31 = vmax.f32 %v2419_v5, %v2420_v11  ;;  %v2805_v23 = vmax.f32 %v2803_v9, %v2804_v56 }
 0x400   : > { %v2385_v46 = vrot.slane %v2384_v45, 1  ;;  %v2769_v13 = vrot.slane %v2768_v63, 1 }
 0x401   : > { %v2422_v3 = vrot.slane %v2421_v31, 1  ;;  %v2806_v60 = vrot.slane %v2805_v23, 1 }
 0x402   : > { %v2386_v57 = vmax.f32 %v2384_v45, %v2385_v46  ;;  %v2770_v15 = vmax.f32 %v2768_v63, %v2769_v13 }
 0x403   : > { %v2423_v16 = vmax.f32 %v2421_v31, %v2422_v3  ;;  %v2807_v44 = vmax.f32 %v2805_v23, %v2806_v60 }
 0x405   : > { %v2427_v39 = vcombine.low %v2386_v57, %v2423_v16  ;;  %v2811_v32 = vcombine.low %v2770_v15, %v2807_v44 }
 0x407   : > { %v2434_v19 = vrot.slane %v2427_v39, %v4206_v49  ;;  %v2818_v12 = vrot.slane %v2811_v32, %v4206_v49 }
 0x409   : > { %v2441_v22 = vrot.slane %v2434_v19, %v4206_v49  ;;  %v2825_v2 = vrot.slane %v2818_v12, %v4206_v49 }
 0x40b   : > { %v2443_v34 = vmax.f32 %v2424_v14, %v2441_v22  ;;  %v2827_v30 = vmax.f32 %v2808_v21, %v2825_v2 }
 0x40d   : > { %2444 = vst.msk [vmem:[%s3434_s12 + $0x4] sm:$0x3] %vm4215_vm1, %v2443_v34  ;;  %2828 = vst.msk [vmem:[%s3434_s12 + $0x6] sm:$0x3] %vm4215_vm1, %v2827_v30 }
 0x40e   : > { %3230 = shalt.err (!%p3227_p8)
}
 0x40f   : > { %s3231_s14 = scalar_lea.hbm %s4236_s20, 128  ;;  %s3235_s11 = scalar_lea.hbm %s4303_s6, 256 }
 0x410   : > { %p3232_p10 = scmp.ne.s32.totalorder %s4236_s20, %s3231_s14  ;;  %p3236_p13 = scmp.lt.u32.totalorder %s4236_s20, %s4303_s6 }
 0x411   : > { %p3237_p0 = scmp.lt.u32.totalorder %s3235_s11, %s3231_s14  ;;  %p3239_p2 = scmp.lt.u32.totalorder %s3231_s14, %s4236_s20 }
 0x412   : > { %p3233_p11 = pnand %p3232_p10, %p3403_p3 }
 0x413   : > { %p3238_p1 = por %p3237_p0, %p3236_p13 }
 0x414   : > { %p3234_p12 = pneg %p3233_p11 }
 0x415   : > { %p3240_p4 = por %p3239_p2, %p3238_p1 }
 0x417   : > { %p3241_p5 = pnand %p3240_p4, %p3234_p12 }
 0x419   : > { %3244 = shalt.err (!%p3241_p5)
}
 0x41a   : > { %3090 = dma.vmem_to_hbm [thread:$0]  (%p3403_p3), %s4238_s17, 128, %s4236_s20, %s2830_s25  }
 0x41b PF: > { %p3096_p6 = scmp.ge.s32.totalorder %s3311_s28, 2  ;;  %s2856_s29 = sand.u32 1, %s3283_s21  }
 0x41c   : > { %s2857_s30 = scalar_lea.sflag [#allocation3], %s2856_s29 }
 0x41d   : > { %p3093_p7 = pnand %p3096_p6, %p3413_p9 }
 0x41f   : > { %3278 = dma.done.wait (!%p3093_p7), %s2857_s30, 128  }
 0x420   : > { %3280 = vsyncadd (!%p3093_p7), %s2857_s30, 4294967168  ;;  %s19_s28 = sadd.s32 1, %s3311_s28   ;;  %s4308_s21 = smov %s3287_s22 }
 0x421   : > { %p16_p8 = scmp.ge.s32.totalorder %s19_s28, 6   ;;  %s4309_s22 = smov %s3291_s23 }
 0x422   : > { %s4310_s23 = smov %s3421_s13  ;;  %s4311_s24 = smov %s3303_s26 }
 0x423   : > { %s4312_s25 = smov %s3307_s27  ;;  %s4313_s26 = smov %s4316_s7 }
 0x424   : > { %s4314_s27 = smov %s4320_s8  ;;  %18 = sbr.rel (!%p16_p8) target bundleno = 5 (0x5), region = 83 }
 0x42b   :  { %2862 = vsyncpa [#allocation3], 1 }
 0x42c   :  { %2864 = vsyncpa [#allocation3 + $0x1], 1 }

</bundles_post_ra>
